<compile_context>
chip_gen: v5e
topology: v5e:2x2
jax: 0.10.0
libtpu: 0.0.40
codegen_flags: <defaults>
</compile_context>

<pallas_src>
import math

import jax
import jax.numpy as jnp
from jax import lax
from jax.experimental import pallas as pl
from jax.experimental.pallas import tpu as pltpu

# ----------------------------- model config ---------------------------------
D = 32                 # d_model
H = 4                  # nhead
HD = D // H            # head dim
F = 64                 # dim_feedforward
B = 2                  # batch (batch_first=True)
S_PM = 4               # src ("PM") sequence length == split_point
S_VM = 4               # tgt ("VM") sequence length
L = S_PM + S_VM        # per-batch local sequence length (src rows then tgt rows)
EPS = 1e-5
NEG = -1e9             # additive "masked" value

# ---- bf16 weight-slab layout (rows x 192 lanes); every slice is a lane prefix
# ---- or stays inside one 128-lane tile ---------------------------------------
_R_PC_QKV = 0      # (32, 192)  [diag(g2)Wqkv_parent | diag(g3)Wqkv_child], q cols pre-scaled
_R_LOC_QKV = 32    # (32, 96)   local Wqkv (q cols pre-scaled)
_R_ED_QKV = 64     # (32, 96)   enc-dec Wqkv (q<-ln4_vm fold, kv<-ln4_pm fold)
_R_WO = 96         # (32, 128)  cols 0:32 local Wo, 32:96 [Wo_par|Wo_chi], 96:128 enc-dec Wo
_R_W1 = 128        # (32, 128)  [diag(g5pm)W1_pm | diag(g5vm)W1_vm]
_R_W2 = 160        # (128, 64)  block-diag: W2_pm -> [0:64,0:32], W2_vm -> [64:128,32:64]
W_SLAB_ROWS = 288
W_SLAB_COLS = 192

# ---- f32 vector slab rows (row-independent bias vectors) ---------------------
_V_B_LOC_QKV = 0   # (96,)
_V_BO_LOC = 1      # (32,)
_V_B_ED_QKV = 2    # (96,)
_V_BO_ED = 3       # (32,)
_V_BO_PC = 4       # (64,)  [bo_parent | bo_child]
_V_B1 = 5          # (128,) [b1_pm' | b1_vm'] (ln5 beta folded in)
_V_B2 = 6          # (64,)  [b2_pm | b2_vm]
V_SLAB_ROWS = 8

# ---- f32 per-row slab: rows 0:8 ln1 gamma(cols 0:32)/beta(cols 32:64),
# ----                  rows 8:16 merged parent/child qkv bias (cols 0:96) -----
R_SLAB_ROWS = 16

# ---- per-batch mask slab: rows 0:8 local, 8:16 parent/child, 16:24 enc-dec ---
M_ROWS = 3 * L


# ------------------------------- kernel -------------------------------------
def _decoder_layer_kernel(x_ref, m_ref, w_ref, v_ref, r_ref, o_ref):
    x = x_ref[...]                                     # (L, D) f32, one batch
    is_src = lax.broadcasted_iota(jnp.int32, (L, 1), 0) < S_PM
    w_avg = jnp.full((D, 1), 1.0 / D, jnp.float32)     # hoisted constants
    ones_col = jnp.full((L, 1), 1.0, jnp.float32)

    def wmat(r0, rows, c0, cols):                      # bf16 weight tile -> f32
        return w_ref[r0:r0 + rows, c0:c0 + cols].astype(jnp.float32)

    def vec(row, n):                                   # (1, n) broadcastable bias
        return v_ref[row:row + 1, 0:n]

    def norm(y):
        # one-pass layernorm stats on the MXU (no dependent XLU reduce chain);
        # gamma/beta are folded into the consuming projections (or per-row slab).
        mu = jnp.dot(y, w_avg, preferred_element_type=jnp.float32)
        ex2 = jnp.dot(y * y, w_avg, preferred_element_type=jnp.float32)
        return (y - mu) * lax.rsqrt(ex2 - mu * mu + EPS)

    def mha(qkv, mask, wo, bo):
        # qkv: (L, 3D) with 1/sqrt(HD) already folded into the q columns.
        q, k, v = qkv[:, 0:D], qkv[:, D:2 * D], qkv[:, 2 * D:3 * D]
        v1 = jnp.concatenate([v, ones_col], axis=1)    # softmax denom rides the ctx matmul
        ctxs = []
        for h in range(H):
            sl = slice(h * HD, (h + 1) * HD)
            s = lax.dot_general(q[:, sl], k[:, sl], (((1,), (1,)), ((), ())),
                                preferred_element_type=jnp.float32) + mask
            p = jnp.exp(s - jnp.max(s, axis=-1, keepdims=True))
            ce = jnp.dot(p, v1, preferred_element_type=jnp.float32)      # (L, D+1)
            ctxs.append(ce[:, sl] * pl.reciprocal(ce[:, D:D + 1], approx=False))
        out = bo                                       # 4 out-proj dots kept adjacent (v7x MRB)
        for h in range(H):
            out = out + jnp.dot(ctxs[h], wo[h * HD:(h + 1) * HD, :],
                                preferred_element_type=jnp.float32)
        return out

    # ---- stage 1: local (split) attention over [norm1_pm(src); norm1_vm(tgt)]
    x1 = norm(x) * r_ref[0:L, 0:D] + r_ref[0:L, D:2 * D]     # per-row ln1 gamma/beta
    qkv1 = jnp.dot(x1, wmat(_R_LOC_QKV, D, 0, 3 * D),
                   preferred_element_type=jnp.float32) + vec(_V_B_LOC_QKV, 3 * D)
    x = x + mha(qkv1, m_ref[0:L, :], wmat(_R_WO, D, 0, D), vec(_V_BO_LOC, D))

    # ---- stage 2: merged parent (src rows) / child (tgt rows) self-attention --
    # ln2/ln3 gamma+beta and the q-scale are folded into the packed weights/bias.
    qkv2f = jnp.dot(norm(x), wmat(_R_PC_QKV, D, 0, 6 * D),
                    preferred_element_type=jnp.float32)                  # (L, 192)
    qkv2 = jnp.where(is_src, qkv2f[:, 0:3 * D], qkv2f[:, 3 * D:6 * D]) \
        + r_ref[L:2 * L, 0:3 * D]
    pc = mha(qkv2, m_ref[L:2 * L, :], wmat(_R_WO, D, D, 2 * D), vec(_V_BO_PC, 2 * D))
    x = x + jnp.where(is_src, pc[:, 0:D], pc[:, D:2 * D])

    # ---- stage 3: enc-dec cross attention (tgt queries, src keys/values) ------
    # computed over all 8 rows; src-query rows are discarded at the residual and
    # tgt-key columns are masked out, so only tgt<-src attention survives.
    qkv3 = jnp.dot(norm(x), wmat(_R_ED_QKV, D, 0, 3 * D),
                   preferred_element_type=jnp.float32) + vec(_V_B_ED_QKV, 3 * D)
    ed = mha(qkv3, m_ref[2 * L:3 * L, :], wmat(_R_WO, D, 3 * D, D), vec(_V_BO_ED, D))
    x = x + jnp.where(is_src, 0.0, ed)

    # ---- stage 4: fused PM/VM feed-forward -------------------------------------
    hid = jnp.maximum(jnp.dot(norm(x), wmat(_R_W1, D, 0, 2 * F),
                              preferred_element_type=jnp.float32) + vec(_V_B1, 2 * F), 0.0)
    f2 = jnp.dot(hid, wmat(_R_W2, 2 * F, 0, 2 * D),
                 preferred_element_type=jnp.float32) + vec(_V_B2, 2 * D)
    x = x + jnp.where(is_src, f2[:, 0:D], f2[:, D:2 * D])

    o_ref[...] = x


# ------------------------------ host-side packing ----------------------------
def pack_params(p):
    """Pack all weights (bf16) / biases (f32) / per-row LN constants (f32) into
    three slabs.  Runs ONCE (eval-mode weights are static) — not per call."""
    scale = 1.0 / math.sqrt(HD)

    def fold_qkv(wqkv, bqkv, ln_q, ln_kv):
        wq, wk, wv = wqkv[:, 0:D], wqkv[:, D:2 * D], wqkv[:, 2 * D:3 * D]
        bq, bk, bv = bqkv[0:D], bqkv[D:2 * D], bqkv[2 * D:3 * D]

        def f(w, b, ln):
            if ln is None:
                return w, b
            return ln["g"][:, None] * w, ln["b"] @ w + b

        wq, bq = f(wq, bq, ln_q)
        wk, bk = f(wk, bk, ln_kv)
        wv, bv = f(wv, bv, ln_kv)
        return (jnp.concatenate([wq * scale, wk, wv], axis=1),
                jnp.concatenate([bq * scale, bk, bv]))

    w_loc, b_loc = fold_qkv(p["local"]["wqkv"], p["local"]["bqkv"], None, None)
    w_par, b_par = fold_qkv(p["parent"]["wqkv"], p["parent"]["bqkv"], p["ln2"], p["ln2"])
    w_chi, b_chi = fold_qkv(p["child"]["wqkv"], p["child"]["bqkv"], p["ln3"], p["ln3"])
    w_ed, b_ed = fold_qkv(p["encdec"]["wqkv"], p["encdec"]["bqkv"],
                          p["ln4_vm"], p["ln4_pm"])

    w1_cat = jnp.concatenate([p["ln5_pm"]["g"][:, None] * p["w1_pm"],
                              p["ln5_vm"]["g"][:, None] * p["w1_vm"]], axis=1)
    b1_cat = jnp.concatenate([p["ln5_pm"]["b"] @ p["w1_pm"] + p["b1_pm"],
                              p["ln5_vm"]["b"] @ p["w1_vm"] + p["b1_vm"]])
    w2_bd = jnp.zeros((2 * F, 2 * D), jnp.float32)
    w2_bd = w2_bd.at[0:F, 0:D].set(p["w2_pm"]).at[F:2 * F, D:2 * D].set(p["w2_vm"])

    W = jnp.zeros((W_SLAB_ROWS, W_SLAB_COLS), jnp.float32)
    W = W.at[_R_PC_QKV:_R_PC_QKV + D, 0:6 * D].set(jnp.concatenate([w_par, w_chi], axis=1))
    W = W.at[_R_LOC_QKV:_R_LOC_QKV + D, 0:3 * D].set(w_loc)
    W = W.at[_R_ED_QKV:_R_ED_QKV + D, 0:3 * D].set(w_ed)
    W = W.at[_R_WO:_R_WO + D, 0:D].set(p["local"]["wo"])
    W = W.at[_R_WO:_R_WO + D, D:3 * D].set(
        jnp.concatenate([p["parent"]["wo"], p["child"]["wo"]], axis=1))
    W = W.at[_R_WO:_R_WO + D, 3 * D:4 * D].set(p["encdec"]["wo"])
    W = W.at[_R_W1:_R_W1 + D, 0:2 * F].set(w1_cat)
    W = W.at[_R_W2:_R_W2 + 2 * F, 0:2 * D].set(w2_bd)
    W = W.astype(jnp.bfloat16)          # halves the exposed weight DMA

    V = jnp.zeros((V_SLAB_ROWS, 128), jnp.float32)
    V = V.at[_V_B_LOC_QKV, 0:3 * D].set(b_loc)
    V = V.at[_V_BO_LOC, 0:D].set(p["local"]["bo"])
    V = V.at[_V_B_ED_QKV, 0:3 * D].set(b_ed)
    V = V.at[_V_BO_ED, 0:D].set(p["encdec"]["bo"])
    V = V.at[_V_BO_PC, 0:2 * D].set(jnp.concatenate([p["parent"]["bo"], p["child"]["bo"]]))
    V = V.at[_V_B1, 0:2 * F].set(b1_cat)
    V = V.at[_V_B2, 0:2 * D].set(jnp.concatenate([p["b2_pm"], p["b2_vm"]]))

    R = jnp.zeros((R_SLAB_ROWS, 128), jnp.float32)
    g1 = jnp.concatenate([jnp.tile(p["ln1_pm"]["g"][None, :], (S_PM, 1)),
                          jnp.tile(p["ln1_vm"]["g"][None, :], (S_VM, 1))], axis=0)
    be1 = jnp.concatenate([jnp.tile(p["ln1_pm"]["b"][None, :], (S_PM, 1)),
                           jnp.tile(p["ln1_vm"]["b"][None, :], (S_VM, 1))], axis=0)
    R = R.at[0:L, 0:D].set(g1)
    R = R.at[0:L, D:2 * D].set(be1)
    b_pc = jnp.concatenate([jnp.tile(b_par[None, :], (S_PM, 1)),
                            jnp.tile(b_chi[None, :], (S_VM, 1))], axis=0)
    R = R.at[L:2 * L, 0:3 * D].set(b_pc)
    return W, V, R


def build_masks(local_mask, global_mask, tgt_key_padding_mask):
    """Per-batch additive score masks, packed (B, 3*L, L).  Runs ONCE."""
    kp = jnp.where(tgt_key_padding_mask, NEG, 0.0).astype(jnp.float32)   # (B, L)
    kp_src = kp[:, :S_PM]
    kp_tgt = kp[:, S_PM:]

    # local attention: the module's _local_block ignores the key padding mask.
    m_local = jnp.broadcast_to(local_mask.astype(jnp.float32), (B, L, L))

    # merged parent/child: block-diagonal (src<->src with src key padding,
    # tgt<->tgt with tgt key padding, NEG elsewhere).
    top = jnp.concatenate([jnp.broadcast_to(kp_src[:, None, :], (B, S_PM, S_PM)),
                           jnp.full((B, S_PM, S_VM), NEG, jnp.float32)], axis=2)
    bot = jnp.concatenate([jnp.full((B, S_VM, S_PM), NEG, jnp.float32),
                           jnp.broadcast_to(kp_tgt[:, None, :], (B, S_VM, S_VM))], axis=2)
    m_pc = jnp.concatenate([top, bot], axis=1)

    # enc-dec: tgt queries attend src keys (+ key padding + optional global
    # mask); src-query rows get an all-zero mask on src keys (their output is
    # discarded, this just avoids a fully-masked softmax row).
    gm = jnp.zeros((S_VM, S_PM), jnp.float32) if global_mask is None \
        else global_mask.astype(jnp.float32)
    ed_top = jnp.concatenate([jnp.zeros((B, S_PM, S_PM), jnp.float32),
                              jnp.full((B, S_PM, S_VM), NEG, jnp.float32)], axis=2)
    ed_bot = jnp.concatenate([kp_src[:, None, :] + gm[None, :, :],
                              jnp.full((B, S_VM, S_VM), NEG, jnp.float32)], axis=2)
    m_ed = jnp.concatenate([ed_top, ed_bot], axis=1)

    return jnp.concatenate([m_local, m_pc, m_ed], axis=1)       # (B, 3L, L)


# ------------------------------ pallas wrapper --------------------------------
def _pallas_forward(x, masks, w_slab, v_slab, r_slab):
    return pl.pallas_call(
        _decoder_layer_kernel,
        out_shape=jax.ShapeDtypeStruct((B, L, D), jnp.float32),
        grid=(B,),                       # batches independent -> parallel across TCs (v7x)
        in_specs=[
            pl.BlockSpec((None, L, D), lambda b: (b, 0, 0)),
            pl.BlockSpec((None, M_ROWS, L), lambda b: (b, 0, 0)),
            pl.BlockSpec((W_SLAB_ROWS, W_SLAB_COLS), lambda b: (0, 0)),
            pl.BlockSpec((V_SLAB_ROWS, 128), lambda b: (0, 0)),
            pl.BlockSpec((R_SLAB_ROWS, 128), lambda b: (0, 0)),
        ],
        out_specs=pl.BlockSpec((None, L, D), lambda b: (b, 0, 0)),
        compiler_params=pltpu.CompilerParams(
            dimension_semantics=("parallel",)),
    )(x, masks, w_slab, v_slab, r_slab)


@jax.jit
def decoder_layer_apply(src, tgt, mask_slab, w_slab, v_slab, r_slab):
    """Jitted forward: src (B,S_PM,D), tgt (B,S_VM,D) -> (src_out, tgt_out, None)."""
    x = jnp.concatenate([src, tgt], axis=1)            # (B, L, D)
    out = _pallas_forward(x, mask_slab, w_slab, v_slab, r_slab)
    return out[:, :S_PM, :], out[:, S_PM:, :], None    # need_attn_weights=False


# ------------------------------ parameters -----------------------------------
def init_params(key):
    ks = iter(jax.random.split(key, 48))
    sc = 0.08

    def mat(din, dout):
        return sc * jax.random.normal(next(ks), (din, dout), jnp.float32)

    def vecp(n):
        return sc * jax.random.normal(next(ks), (n,), jnp.float32)

    def attn():
        # weights stored transposed (in_dim, out_dim) so the kernel does x @ W
        return {"wqkv": mat(D, 3 * D), "bqkv": vecp(3 * D),
                "wo": mat(D, D), "bo": vecp(D)}

    def ln():
        return {"g": 1.0 + 0.1 * jax.random.normal(next(ks), (D,), jnp.float32),
                "b": 0.1 * jax.random.normal(next(ks), (D,), jnp.float32)}

    return {
        "local": attn(), "parent": attn(), "child": attn(), "encdec": attn(),
        "w1_pm": mat(D, F), "b1_pm": vecp(F), "w2_pm": mat(F, D), "b2_pm": vecp(D),
        "w1_vm": mat(D, F), "b1_vm": vecp(F), "w2_vm": mat(F, D), "b2_vm": vecp(D),
        "ln1_pm": ln(), "ln1_vm": ln(), "ln2": ln(), "ln3": ln(),
        "ln4_pm": ln(), "ln4_vm": ln(), "ln5_pm": ln(), "ln5_vm": ln(),
    }


# --------------------------- pure-JAX reference -------------------------------
def reference_forward(src, tgt, local_mask, global_mask, tgt_key_padding_mask, p):
    def ln(x, q):
        mu = x.mean(-1, keepdims=True)
        var = ((x - mu) ** 2).mean(-1, keepdims=True)
        return (x - mu) / jnp.sqrt(var + EPS) * q["g"] + q["b"]

    def mha(xq, xkv, a, mask):
        q = xq @ a["wqkv"][:, :D] + a["bqkv"][:D]
        k = xkv @ a["wqkv"][:, D:2 * D] + a["bqkv"][D:2 * D]
        v = xkv @ a["wqkv"][:, 2 * D:] + a["bqkv"][2 * D:]
        sq, sk = q.shape[1], k.shape[1]
        qh = q.reshape(B, sq, H, HD).transpose(0, 2, 1, 3)
        kh = k.reshape(B, sk, H, HD).transpose(0, 2, 1, 3)
        vh = v.reshape(B, sk, H, HD).transpose(0, 2, 1, 3)
        s = jnp.einsum("bhqd,bhkd->bhqk", qh, kh) / math.sqrt(HD) + mask
        w = jax.nn.softmax(s, axis=-1)
        ctx = jnp.einsum("bhqk,bhkd->bhqd", w, vh).transpose(0, 2, 1, 3).reshape(B, sq, D)
        return ctx @ a["wo"] + a["bo"]

    def ffn(x, w1, b1, w2, b2):
        return jnp.maximum(x @ w1 + b1, 0.0) @ w2 + b2

    kp = jnp.where(tgt_key_padding_mask, NEG, 0.0)
    kp_src = kp[:, :S_PM][:, None, None, :]
    kp_tgt = kp[:, S_PM:][:, None, None, :]

    x_loc = jnp.concatenate([ln(src, p["ln1_pm"]), ln(tgt, p["ln1_vm"])], axis=1)
    loc = mha(x_loc, x_loc, p["local"], local_mask)
    src = src + loc[:, :S_PM]
    tgt = tgt + loc[:, S_PM:]
    src = src + mha(ln(src, p["ln2"]), ln(src, p["ln2"]), p["parent"], kp_src)
    tgt = tgt + mha(ln(tgt, p["ln3"]), ln(tgt, p["ln3"]), p["child"], kp_tgt)
    g = 0.0 if global_mask is None else global_mask
    tgt = tgt + mha(ln(tgt, p["ln4_vm"]), ln(src, p["ln4_pm"]), p["encdec"], kp_src + g)
    src = src + ffn(ln(src, p["ln5_pm"]), p["w1_pm"], p["b1_pm"], p["w2_pm"], p["b2_pm"])
    tgt = tgt + ffn(ln(tgt, p["ln5_vm"]), p["w1_vm"], p["b1_vm"], p["w2_vm"], p["b2_vm"])
    return src, tgt, None


# ----------------------------------- main -------------------------------------
if __name__ == "__main__":
    key = jax.random.PRNGKey(0)
    k_src, k_tgt, k_par = jax.random.split(key, 3)
    src = jax.random.normal(k_src, (B, S_PM, D), jnp.float32)
    tgt = jax.random.normal(k_tgt, (B, S_VM, D), jnp.float32)
    params = init_params(k_par)

    # "ultra-sparse" local mask: PM rows attend PM only; VM rows attend PM + VM.
    allowed = jnp.zeros((L, L), dtype=bool)
    allowed = allowed.at[:S_PM, :S_PM].set(True)
    allowed = allowed.at[S_PM:, :].set(True)
    local_mask = jnp.where(allowed, 0.0, NEG).astype(jnp.float32)
    # key padding: last VM token of batch 1 is padding.
    tgt_key_padding_mask = jnp.zeros((B, L), dtype=bool).at[1, L - 1].set(True)

    # Host-side packing / mask building runs ONCE (static in eval), not per call.
    w_slab, v_slab, r_slab = pack_params(params)
    mask_slab = build_masks(local_mask, None, tgt_key_padding_mask)

    src_o, tgt_o, attn_w = decoder_layer_apply(
        src, tgt, mask_slab, w_slab, v_slab, r_slab)
    src_o, tgt_o = jax.block_until_ready((src_o, tgt_o))

    src_r, tgt_r, _ = reference_forward(
        src, tgt, local_mask, None, tgt_key_padding_mask, params)

    assert src_o.shape == (B, S_PM, D) and tgt_o.shape == (B, S_VM, D)
    assert attn_w is None
    # weights are stored in bf16 in the kernel (f32 accumulation) -> relaxed
    # tolerance vs the pure-f32 reference.
    assert jnp.allclose(src_o, src_r, atol=2e-2, rtol=2e-2), "src mismatch vs reference"
    assert jnp.allclose(tgt_o, tgt_r, atol=2e-2, rtol=2e-2), "tgt mismatch vs reference"

    print("KERNEL_OK")
</pallas_src>

<mosaic_0001>
module attributes {stable_mosaic.version = 11 : i64} {
  func.func @_decoder_layer_kernel(%arg0: i32, %arg1: memref<1x8x32xf32, #tpu.memory_space<vmem>>, %arg2: memref<1x24x8xf32, #tpu.memory_space<vmem>>, %arg3: memref<288x192xbf16, #tpu.memory_space<vmem>>, %arg4: memref<8x128xf32, #tpu.memory_space<vmem>>, %arg5: memref<16x128xf32, #tpu.memory_space<vmem>>, %arg6: memref<1x8x32xf32, #tpu.memory_space<vmem>>) attributes {dimension_semantics = [#tpu.dimension_semantics<parallel>], iteration_bounds = array<i64: 2>, scalar_prefetch = 0 : i64, scratch_operands = 0 : i64, tpu.core_type = #tpu.core_type<tc>, window_params = [{transform_indices = @transform_0, window_bounds = array<i64: 1, 8, 32>}, {transform_indices = @transform_1, window_bounds = array<i64: 1, 24, 8>}, {pipeline_mode = #tpu.pipeline_mode<synchronous>, transform_indices = @transform_2, window_bounds = array<i64: 288, 192>}, {pipeline_mode = #tpu.pipeline_mode<synchronous>, transform_indices = @transform_3, window_bounds = array<i64: 8, 128>}, {pipeline_mode = #tpu.pipeline_mode<synchronous>, transform_indices = @transform_4, window_bounds = array<i64: 16, 128>}, {transform_indices = @transform_5, window_bounds = array<i64: 1, 8, 32>}]} {
    %c0 = arith.constant 0 : index
    %c0_0 = arith.constant 0 : index
    %c0_1 = arith.constant 0 : index
    %0 = vector.load %arg1[%c0, %c0_0, %c0_1] : memref<1x8x32xf32, #tpu.memory_space<vmem>>, vector<1x8x32xf32>
    %1 = vector.shape_cast %0 : vector<1x8x32xf32> to vector<8x32xf32>
    %2 = tpu.iota {dimensions = array<i32: 0>} : vector<8x1xi32>
    %c4_i32 = arith.constant 4 : i32
    %3 = vector.broadcast %c4_i32 : i32 to vector<8x1xi32>
    %4 = arith.cmpi slt, %2, %3 : vector<8x1xi32>
    %cst = arith.constant 3.125000e-02 : f32
    %5 = vector.broadcast %cst : f32 to vector<32x1xf32>
    %cst_2 = arith.constant 1.000000e+00 : f32
    %6 = vector.broadcast %cst_2 : f32 to vector<8x1xf32>
    %cst_3 = arith.constant dense<0.000000e+00> : vector<8x1xf32>
    %7 = tpu.matmul %1, %5, %cst_3 {dimension_numbers = #tpu.dot_dimension_numbers<[1], [0], [0], [1], [0, 0, 1, 1], [], []>} : vector<8x32xf32>, vector<32x1xf32>, vector<8x1xf32> -> vector<8x1xf32>
    %8 = arith.mulf %1, %1 : vector<8x32xf32>
    %cst_4 = arith.constant dense<0.000000e+00> : vector<8x1xf32>
    %9 = tpu.matmul %8, %5, %cst_4 {dimension_numbers = #tpu.dot_dimension_numbers<[1], [0], [0], [1], [0, 0, 1, 1], [], []>} : vector<8x32xf32>, vector<32x1xf32>, vector<8x1xf32> -> vector<8x1xf32>
    %10 = vector.broadcast %7 : vector<8x1xf32> to vector<8x32xf32>
    %11 = arith.subf %1, %10 : vector<8x32xf32>
    %12 = arith.mulf %7, %7 : vector<8x1xf32>
    %13 = arith.subf %9, %12 : vector<8x1xf32>
    %cst_5 = arith.constant 9.99999974E-6 : f32
    %14 = vector.broadcast %cst_5 : f32 to vector<8x1xf32>
    %15 = arith.addf %13, %14 : vector<8x1xf32>
    %16 = math.rsqrt %15 : vector<8x1xf32>
    %17 = vector.broadcast %16 : vector<8x1xf32> to vector<8x32xf32>
    %18 = arith.mulf %11, %17 : vector<8x32xf32>
    %c0_6 = arith.constant 0 : index
    %c0_7 = arith.constant 0 : index
    %19 = vector.load %arg5[%c0_6, %c0_7] : memref<16x128xf32, #tpu.memory_space<vmem>>, vector<8x32xf32>
    %20 = arith.mulf %18, %19 : vector<8x32xf32>
    %c0_8 = arith.constant 0 : index
    %c32 = arith.constant 32 : index
    %21 = vector.load %arg5[%c0_8, %c32] : memref<16x128xf32, #tpu.memory_space<vmem>>, vector<8x32xf32>
    %22 = arith.addf %20, %21 : vector<8x32xf32>
    %c32_9 = arith.constant 32 : index
    %c0_10 = arith.constant 0 : index
    %23 = vector.load %arg3[%c32_9, %c0_10] : memref<288x192xbf16, #tpu.memory_space<vmem>>, vector<32x96xbf16>
    %24 = arith.extf %23 : vector<32x96xbf16> to vector<32x96xf32>
    %cst_11 = arith.constant dense<0.000000e+00> : vector<8x96xf32>
    %25 = tpu.matmul %22, %24, %cst_11 {dimension_numbers = #tpu.dot_dimension_numbers<[1], [0], [0], [1], [0, 0, 1, 1], [], []>} : vector<8x32xf32>, vector<32x96xf32>, vector<8x96xf32> -> vector<8x96xf32>
    %c0_12 = arith.constant 0 : index
    %c0_13 = arith.constant 0 : index
    %26 = vector.load %arg4[%c0_12, %c0_13] : memref<8x128xf32, #tpu.memory_space<vmem>>, vector<1x96xf32>
    %27 = vector.broadcast %26 : vector<1x96xf32> to vector<8x96xf32>
    %28 = arith.addf %25, %27 : vector<8x96xf32>
    %c0_14 = arith.constant 0 : index
    %c0_15 = arith.constant 0 : index
    %c0_16 = arith.constant 0 : index
    %29 = vector.load %arg2[%c0_14, %c0_15, %c0_16] : memref<1x24x8xf32, #tpu.memory_space<vmem>>, vector<1x8x8xf32>
    %30 = vector.shape_cast %29 : vector<1x8x8xf32> to vector<8x8xf32>
    %c96 = arith.constant 96 : index
    %c0_17 = arith.constant 0 : index
    %31 = vector.load %arg3[%c96, %c0_17] : memref<288x192xbf16, #tpu.memory_space<vmem>>, vector<32x32xbf16>
    %32 = arith.extf %31 : vector<32x32xbf16> to vector<32x32xf32>
    %c1 = arith.constant 1 : index
    %c0_18 = arith.constant 0 : index
    %33 = vector.load %arg4[%c1, %c0_18] : memref<8x128xf32, #tpu.memory_space<vmem>>, vector<1x32xf32>
    %34 = vector.extract_strided_slice %28 {offsets = [0, 0], sizes = [8, 32], strides = [1, 1]} : vector<8x96xf32> to vector<8x32xf32>
    %35 = vector.extract_strided_slice %28 {offsets = [0, 32], sizes = [8, 32], strides = [1, 1]} : vector<8x96xf32> to vector<8x32xf32>
    %36 = vector.extract_strided_slice %28 {offsets = [0, 64], sizes = [8, 32], strides = [1, 1]} : vector<8x96xf32> to vector<8x32xf32>
    %37 = tpu.concatenate %36, %6 in 1 : vector<8x32xf32>, vector<8x1xf32> -> vector<8x33xf32>
    %38 = vector.extract_strided_slice %34 {offsets = [0, 0], sizes = [8, 8], strides = [1, 1]} : vector<8x32xf32> to vector<8x8xf32>
    %39 = vector.extract_strided_slice %35 {offsets = [0, 0], sizes = [8, 8], strides = [1, 1]} : vector<8x32xf32> to vector<8x8xf32>
    %cst_19 = arith.constant dense<0.000000e+00> : vector<8x8xf32>
    %40 = tpu.matmul %38, %39, %cst_19 {dimension_numbers = #tpu.dot_dimension_numbers<[1], [1], [0], [0], [0, 0, 1, 0], [], []>} : vector<8x8xf32>, vector<8x8xf32>, vector<8x8xf32> -> vector<8x8xf32>
    %41 = arith.addf %40, %30 : vector<8x8xf32>
    %cst_20 = arith.constant dense<0xFF800000> : vector<8xf32>
    %42 = vector.multi_reduction <maximumf>, %41, %cst_20 [1] : vector<8x8xf32> to vector<8xf32>
    %43 = vector.shape_cast %42 : vector<8xf32> to vector<8x1xf32>
    %44 = vector.broadcast %43 : vector<8x1xf32> to vector<8x8xf32>
    %45 = arith.subf %41, %44 : vector<8x8xf32>
    %46 = math.exp %45 : vector<8x8xf32>
    %cst_21 = arith.constant dense<0.000000e+00> : vector<8x33xf32>
    %47 = tpu.matmul %46, %37, %cst_21 {dimension_numbers = #tpu.dot_dimension_numbers<[1], [0], [0], [1], [0, 0, 1, 1], [], []>} : vector<8x8xf32>, vector<8x33xf32>, vector<8x33xf32> -> vector<8x33xf32>
    %48 = vector.extract_strided_slice %47 {offsets = [0, 0], sizes = [8, 8], strides = [1, 1]} : vector<8x33xf32> to vector<8x8xf32>
    %49 = vector.extract_strided_slice %47 {offsets = [0, 32], sizes = [8, 1], strides = [1, 1]} : vector<8x33xf32> to vector<8x1xf32>
    %50 = tpu.reciprocal %49 : vector<8x1xf32> -> vector<8x1xf32>
    %51 = vector.broadcast %50 : vector<8x1xf32> to vector<8x8xf32>
    %52 = arith.mulf %48, %51 : vector<8x8xf32>
    %53 = vector.extract_strided_slice %34 {offsets = [0, 8], sizes = [8, 8], strides = [1, 1]} : vector<8x32xf32> to vector<8x8xf32>
    %54 = vector.extract_strided_slice %35 {offsets = [0, 8], sizes = [8, 8], strides = [1, 1]} : vector<8x32xf32> to vector<8x8xf32>
    %cst_22 = arith.constant dense<0.000000e+00> : vector<8x8xf32>
    %55 = tpu.matmul %53, %54, %cst_22 {dimension_numbers = #tpu.dot_dimension_numbers<[1], [1], [0], [0], [0, 0, 1, 0], [], []>} : vector<8x8xf32>, vector<8x8xf32>, vector<8x8xf32> -> vector<8x8xf32>
    %56 = arith.addf %55, %30 : vector<8x8xf32>
    %cst_23 = arith.constant dense<0xFF800000> : vector<8xf32>
    %57 = vector.multi_reduction <maximumf>, %56, %cst_23 [1] : vector<8x8xf32> to vector<8xf32>
    %58 = vector.shape_cast %57 : vector<8xf32> to vector<8x1xf32>
    %59 = vector.broadcast %58 : vector<8x1xf32> to vector<8x8xf32>
    %60 = arith.subf %56, %59 : vector<8x8xf32>
    %61 = math.exp %60 : vector<8x8xf32>
    %cst_24 = arith.constant dense<0.000000e+00> : vector<8x33xf32>
    %62 = tpu.matmul %61, %37, %cst_24 {dimension_numbers = #tpu.dot_dimension_numbers<[1], [0], [0], [1], [0, 0, 1, 1], [], []>} : vector<8x8xf32>, vector<8x33xf32>, vector<8x33xf32> -> vector<8x33xf32>
    %63 = vector.extract_strided_slice %62 {offsets = [0, 8], sizes = [8, 8], strides = [1, 1]} : vector<8x33xf32> to vector<8x8xf32>
    %64 = vector.extract_strided_slice %62 {offsets = [0, 32], sizes = [8, 1], strides = [1, 1]} : vector<8x33xf32> to vector<8x1xf32>
    %65 = tpu.reciprocal %64 : vector<8x1xf32> -> vector<8x1xf32>
    %66 = vector.broadcast %65 : vector<8x1xf32> to vector<8x8xf32>
    %67 = arith.mulf %63, %66 : vector<8x8xf32>
    %68 = vector.extract_strided_slice %34 {offsets = [0, 16], sizes = [8, 8], strides = [1, 1]} : vector<8x32xf32> to vector<8x8xf32>
    %69 = vector.extract_strided_slice %35 {offsets = [0, 16], sizes = [8, 8], strides = [1, 1]} : vector<8x32xf32> to vector<8x8xf32>
    %cst_25 = arith.constant dense<0.000000e+00> : vector<8x8xf32>
    %70 = tpu.matmul %68, %69, %cst_25 {dimension_numbers = #tpu.dot_dimension_numbers<[1], [1], [0], [0], [0, 0, 1, 0], [], []>} : vector<8x8xf32>, vector<8x8xf32>, vector<8x8xf32> -> vector<8x8xf32>
    %71 = arith.addf %70, %30 : vector<8x8xf32>
    %cst_26 = arith.constant dense<0xFF800000> : vector<8xf32>
    %72 = vector.multi_reduction <maximumf>, %71, %cst_26 [1] : vector<8x8xf32> to vector<8xf32>
    %73 = vector.shape_cast %72 : vector<8xf32> to vector<8x1xf32>
    %74 = vector.broadcast %73 : vector<8x1xf32> to vector<8x8xf32>
    %75 = arith.subf %71, %74 : vector<8x8xf32>
    %76 = math.exp %75 : vector<8x8xf32>
    %cst_27 = arith.constant dense<0.000000e+00> : vector<8x33xf32>
    %77 = tpu.matmul %76, %37, %cst_27 {dimension_numbers = #tpu.dot_dimension_numbers<[1], [0], [0], [1], [0, 0, 1, 1], [], []>} : vector<8x8xf32>, vector<8x33xf32>, vector<8x33xf32> -> vector<8x33xf32>
    %78 = vector.extract_strided_slice %77 {offsets = [0, 16], sizes = [8, 8], strides = [1, 1]} : vector<8x33xf32> to vector<8x8xf32>
    %79 = vector.extract_strided_slice %77 {offsets = [0, 32], sizes = [8, 1], strides = [1, 1]} : vector<8x33xf32> to vector<8x1xf32>
    %80 = tpu.reciprocal %79 : vector<8x1xf32> -> vector<8x1xf32>
    %81 = vector.broadcast %80 : vector<8x1xf32> to vector<8x8xf32>
    %82 = arith.mulf %78, %81 : vector<8x8xf32>
    %83 = vector.extract_strided_slice %34 {offsets = [0, 24], sizes = [8, 8], strides = [1, 1]} : vector<8x32xf32> to vector<8x8xf32>
    %84 = vector.extract_strided_slice %35 {offsets = [0, 24], sizes = [8, 8], strides = [1, 1]} : vector<8x32xf32> to vector<8x8xf32>
    %cst_28 = arith.constant dense<0.000000e+00> : vector<8x8xf32>
    %85 = tpu.matmul %83, %84, %cst_28 {dimension_numbers = #tpu.dot_dimension_numbers<[1], [1], [0], [0], [0, 0, 1, 0], [], []>} : vector<8x8xf32>, vector<8x8xf32>, vector<8x8xf32> -> vector<8x8xf32>
    %86 = arith.addf %85, %30 : vector<8x8xf32>
    %cst_29 = arith.constant dense<0xFF800000> : vector<8xf32>
    %87 = vector.multi_reduction <maximumf>, %86, %cst_29 [1] : vector<8x8xf32> to vector<8xf32>
    %88 = vector.shape_cast %87 : vector<8xf32> to vector<8x1xf32>
    %89 = vector.broadcast %88 : vector<8x1xf32> to vector<8x8xf32>
    %90 = arith.subf %86, %89 : vector<8x8xf32>
    %91 = math.exp %90 : vector<8x8xf32>
    %cst_30 = arith.constant dense<0.000000e+00> : vector<8x33xf32>
    %92 = tpu.matmul %91, %37, %cst_30 {dimension_numbers = #tpu.dot_dimension_numbers<[1], [0], [0], [1], [0, 0, 1, 1], [], []>} : vector<8x8xf32>, vector<8x33xf32>, vector<8x33xf32> -> vector<8x33xf32>
    %93 = vector.extract_strided_slice %92 {offsets = [0, 24], sizes = [8, 8], strides = [1, 1]} : vector<8x33xf32> to vector<8x8xf32>
    %94 = vector.extract_strided_slice %92 {offsets = [0, 32], sizes = [8, 1], strides = [1, 1]} : vector<8x33xf32> to vector<8x1xf32>
    %95 = tpu.reciprocal %94 : vector<8x1xf32> -> vector<8x1xf32>
    %96 = vector.broadcast %95 : vector<8x1xf32> to vector<8x8xf32>
    %97 = arith.mulf %93, %96 : vector<8x8xf32>
    %98 = vector.extract_strided_slice %32 {offsets = [0, 0], sizes = [8, 32], strides = [1, 1]} : vector<32x32xf32> to vector<8x32xf32>
    %cst_31 = arith.constant dense<0.000000e+00> : vector<8x32xf32>
    %99 = tpu.matmul %52, %98, %cst_31 {dimension_numbers = #tpu.dot_dimension_numbers<[1], [0], [0], [1], [0, 0, 1, 1], [], []>} : vector<8x8xf32>, vector<8x32xf32>, vector<8x32xf32> -> vector<8x32xf32>
    %100 = vector.broadcast %33 : vector<1x32xf32> to vector<8x32xf32>
    %101 = arith.addf %100, %99 : vector<8x32xf32>
    %102 = vector.extract_strided_slice %32 {offsets = [8, 0], sizes = [8, 32], strides = [1, 1]} : vector<32x32xf32> to vector<8x32xf32>
    %cst_32 = arith.constant dense<0.000000e+00> : vector<8x32xf32>
    %103 = tpu.matmul %67, %102, %cst_32 {dimension_numbers = #tpu.dot_dimension_numbers<[1], [0], [0], [1], [0, 0, 1, 1], [], []>} : vector<8x8xf32>, vector<8x32xf32>, vector<8x32xf32> -> vector<8x32xf32>
    %104 = arith.addf %101, %103 : vector<8x32xf32>
    %105 = vector.extract_strided_slice %32 {offsets = [16, 0], sizes = [8, 32], strides = [1, 1]} : vector<32x32xf32> to vector<8x32xf32>
    %cst_33 = arith.constant dense<0.000000e+00> : vector<8x32xf32>
    %106 = tpu.matmul %82, %105, %cst_33 {dimension_numbers = #tpu.dot_dimension_numbers<[1], [0], [0], [1], [0, 0, 1, 1], [], []>} : vector<8x8xf32>, vector<8x32xf32>, vector<8x32xf32> -> vector<8x32xf32>
    %107 = arith.addf %104, %106 : vector<8x32xf32>
    %108 = vector.extract_strided_slice %32 {offsets = [24, 0], sizes = [8, 32], strides = [1, 1]} : vector<32x32xf32> to vector<8x32xf32>
    %cst_34 = arith.constant dense<0.000000e+00> : vector<8x32xf32>
    %109 = tpu.matmul %97, %108, %cst_34 {dimension_numbers = #tpu.dot_dimension_numbers<[1], [0], [0], [1], [0, 0, 1, 1], [], []>} : vector<8x8xf32>, vector<8x32xf32>, vector<8x32xf32> -> vector<8x32xf32>
    %110 = arith.addf %107, %109 : vector<8x32xf32>
    %111 = arith.addf %1, %110 : vector<8x32xf32>
    %cst_35 = arith.constant dense<0.000000e+00> : vector<8x1xf32>
    %112 = tpu.matmul %111, %5, %cst_35 {dimension_numbers = #tpu.dot_dimension_numbers<[1], [0], [0], [1], [0, 0, 1, 1], [], []>} : vector<8x32xf32>, vector<32x1xf32>, vector<8x1xf32> -> vector<8x1xf32>
    %113 = arith.mulf %111, %111 : vector<8x32xf32>
    %cst_36 = arith.constant dense<0.000000e+00> : vector<8x1xf32>
    %114 = tpu.matmul %113, %5, %cst_36 {dimension_numbers = #tpu.dot_dimension_numbers<[1], [0], [0], [1], [0, 0, 1, 1], [], []>} : vector<8x32xf32>, vector<32x1xf32>, vector<8x1xf32> -> vector<8x1xf32>
    %115 = vector.broadcast %112 : vector<8x1xf32> to vector<8x32xf32>
    %116 = arith.subf %111, %115 : vector<8x32xf32>
    %117 = arith.mulf %112, %112 : vector<8x1xf32>
    %118 = arith.subf %114, %117 : vector<8x1xf32>
    %cst_37 = arith.constant 9.99999974E-6 : f32
    %119 = vector.broadcast %cst_37 : f32 to vector<8x1xf32>
    %120 = arith.addf %118, %119 : vector<8x1xf32>
    %121 = math.rsqrt %120 : vector<8x1xf32>
    %122 = vector.broadcast %121 : vector<8x1xf32> to vector<8x32xf32>
    %123 = arith.mulf %116, %122 : vector<8x32xf32>
    %c0_38 = arith.constant 0 : index
    %c0_39 = arith.constant 0 : index
    %124 = vector.load %arg3[%c0_38, %c0_39] : memref<288x192xbf16, #tpu.memory_space<vmem>>, vector<32x192xbf16>
    %125 = arith.extf %124 : vector<32x192xbf16> to vector<32x192xf32>
    %cst_40 = arith.constant dense<0.000000e+00> : vector<8x192xf32>
    %126 = tpu.matmul %123, %125, %cst_40 {dimension_numbers = #tpu.dot_dimension_numbers<[1], [0], [0], [1], [0, 0, 1, 1], [], []>} : vector<8x32xf32>, vector<32x192xf32>, vector<8x192xf32> -> vector<8x192xf32>
    %127 = vector.extract_strided_slice %126 {offsets = [0, 0], sizes = [8, 96], strides = [1, 1]} : vector<8x192xf32> to vector<8x96xf32>
    %128 = vector.extract_strided_slice %126 {offsets = [0, 96], sizes = [8, 96], strides = [1, 1]} : vector<8x192xf32> to vector<8x96xf32>
    %129 = vector.shape_cast %4 : vector<8x1xi1> to vector<8x1xi1>
    %130 = vector.broadcast %129 : vector<8x1xi1> to vector<8x96xi1>
    %131 = arith.select %130, %127, %128 : vector<8x96xi1>, vector<8x96xf32>
    %c8 = arith.constant 8 : index
    %c0_41 = arith.constant 0 : index
    %132 = vector.load %arg5[%c8, %c0_41] : memref<16x128xf32, #tpu.memory_space<vmem>>, vector<8x96xf32>
    %133 = arith.addf %131, %132 : vector<8x96xf32>
    %c0_42 = arith.constant 0 : index
    %c8_43 = arith.constant 8 : index
    %c0_44 = arith.constant 0 : index
    %134 = vector.load %arg2[%c0_42, %c8_43, %c0_44] : memref<1x24x8xf32, #tpu.memory_space<vmem>>, vector<1x8x8xf32>
    %135 = vector.shape_cast %134 : vector<1x8x8xf32> to vector<8x8xf32>
    %c96_45 = arith.constant 96 : index
    %c32_46 = arith.constant 32 : index
    %136 = vector.load %arg3[%c96_45, %c32_46] : memref<288x192xbf16, #tpu.memory_space<vmem>>, vector<32x64xbf16>
    %137 = arith.extf %136 : vector<32x64xbf16> to vector<32x64xf32>
    %c4 = arith.constant 4 : index
    %c0_47 = arith.constant 0 : index
    %138 = vector.load %arg4[%c4, %c0_47] : memref<8x128xf32, #tpu.memory_space<vmem>>, vector<1x64xf32>
    %139 = vector.extract_strided_slice %133 {offsets = [0, 0], sizes = [8, 32], strides = [1, 1]} : vector<8x96xf32> to vector<8x32xf32>
    %140 = vector.extract_strided_slice %133 {offsets = [0, 32], sizes = [8, 32], strides = [1, 1]} : vector<8x96xf32> to vector<8x32xf32>
    %141 = vector.extract_strided_slice %133 {offsets = [0, 64], sizes = [8, 32], strides = [1, 1]} : vector<8x96xf32> to vector<8x32xf32>
    %142 = tpu.concatenate %141, %6 in 1 : vector<8x32xf32>, vector<8x1xf32> -> vector<8x33xf32>
    %143 = vector.extract_strided_slice %139 {offsets = [0, 0], sizes = [8, 8], strides = [1, 1]} : vector<8x32xf32> to vector<8x8xf32>
    %144 = vector.extract_strided_slice %140 {offsets = [0, 0], sizes = [8, 8], strides = [1, 1]} : vector<8x32xf32> to vector<8x8xf32>
    %cst_48 = arith.constant dense<0.000000e+00> : vector<8x8xf32>
    %145 = tpu.matmul %143, %144, %cst_48 {dimension_numbers = #tpu.dot_dimension_numbers<[1], [1], [0], [0], [0, 0, 1, 0], [], []>} : vector<8x8xf32>, vector<8x8xf32>, vector<8x8xf32> -> vector<8x8xf32>
    %146 = arith.addf %145, %135 : vector<8x8xf32>
    %cst_49 = arith.constant dense<0xFF800000> : vector<8xf32>
    %147 = vector.multi_reduction <maximumf>, %146, %cst_49 [1] : vector<8x8xf32> to vector<8xf32>
    %148 = vector.shape_cast %147 : vector<8xf32> to vector<8x1xf32>
    %149 = vector.broadcast %148 : vector<8x1xf32> to vector<8x8xf32>
    %150 = arith.subf %146, %149 : vector<8x8xf32>
    %151 = math.exp %150 : vector<8x8xf32>
    %cst_50 = arith.constant dense<0.000000e+00> : vector<8x33xf32>
    %152 = tpu.matmul %151, %142, %cst_50 {dimension_numbers = #tpu.dot_dimension_numbers<[1], [0], [0], [1], [0, 0, 1, 1], [], []>} : vector<8x8xf32>, vector<8x33xf32>, vector<8x33xf32> -> vector<8x33xf32>
    %153 = vector.extract_strided_slice %152 {offsets = [0, 0], sizes = [8, 8], strides = [1, 1]} : vector<8x33xf32> to vector<8x8xf32>
    %154 = vector.extract_strided_slice %152 {offsets = [0, 32], sizes = [8, 1], strides = [1, 1]} : vector<8x33xf32> to vector<8x1xf32>
    %155 = tpu.reciprocal %154 : vector<8x1xf32> -> vector<8x1xf32>
    %156 = vector.broadcast %155 : vector<8x1xf32> to vector<8x8xf32>
    %157 = arith.mulf %153, %156 : vector<8x8xf32>
    %158 = vector.extract_strided_slice %139 {offsets = [0, 8], sizes = [8, 8], strides = [1, 1]} : vector<8x32xf32> to vector<8x8xf32>
    %159 = vector.extract_strided_slice %140 {offsets = [0, 8], sizes = [8, 8], strides = [1, 1]} : vector<8x32xf32> to vector<8x8xf32>
    %cst_51 = arith.constant dense<0.000000e+00> : vector<8x8xf32>
    %160 = tpu.matmul %158, %159, %cst_51 {dimension_numbers = #tpu.dot_dimension_numbers<[1], [1], [0], [0], [0, 0, 1, 0], [], []>} : vector<8x8xf32>, vector<8x8xf32>, vector<8x8xf32> -> vector<8x8xf32>
    %161 = arith.addf %160, %135 : vector<8x8xf32>
    %cst_52 = arith.constant dense<0xFF800000> : vector<8xf32>
    %162 = vector.multi_reduction <maximumf>, %161, %cst_52 [1] : vector<8x8xf32> to vector<8xf32>
    %163 = vector.shape_cast %162 : vector<8xf32> to vector<8x1xf32>
    %164 = vector.broadcast %163 : vector<8x1xf32> to vector<8x8xf32>
    %165 = arith.subf %161, %164 : vector<8x8xf32>
    %166 = math.exp %165 : vector<8x8xf32>
    %cst_53 = arith.constant dense<0.000000e+00> : vector<8x33xf32>
    %167 = tpu.matmul %166, %142, %cst_53 {dimension_numbers = #tpu.dot_dimension_numbers<[1], [0], [0], [1], [0, 0, 1, 1], [], []>} : vector<8x8xf32>, vector<8x33xf32>, vector<8x33xf32> -> vector<8x33xf32>
    %168 = vector.extract_strided_slice %167 {offsets = [0, 8], sizes = [8, 8], strides = [1, 1]} : vector<8x33xf32> to vector<8x8xf32>
    %169 = vector.extract_strided_slice %167 {offsets = [0, 32], sizes = [8, 1], strides = [1, 1]} : vector<8x33xf32> to vector<8x1xf32>
    %170 = tpu.reciprocal %169 : vector<8x1xf32> -> vector<8x1xf32>
    %171 = vector.broadcast %170 : vector<8x1xf32> to vector<8x8xf32>
    %172 = arith.mulf %168, %171 : vector<8x8xf32>
    %173 = vector.extract_strided_slice %139 {offsets = [0, 16], sizes = [8, 8], strides = [1, 1]} : vector<8x32xf32> to vector<8x8xf32>
    %174 = vector.extract_strided_slice %140 {offsets = [0, 16], sizes = [8, 8], strides = [1, 1]} : vector<8x32xf32> to vector<8x8xf32>
    %cst_54 = arith.constant dense<0.000000e+00> : vector<8x8xf32>
    %175 = tpu.matmul %173, %174, %cst_54 {dimension_numbers = #tpu.dot_dimension_numbers<[1], [1], [0], [0], [0, 0, 1, 0], [], []>} : vector<8x8xf32>, vector<8x8xf32>, vector<8x8xf32> -> vector<8x8xf32>
    %176 = arith.addf %175, %135 : vector<8x8xf32>
    %cst_55 = arith.constant dense<0xFF800000> : vector<8xf32>
    %177 = vector.multi_reduction <maximumf>, %176, %cst_55 [1] : vector<8x8xf32> to vector<8xf32>
    %178 = vector.shape_cast %177 : vector<8xf32> to vector<8x1xf32>
    %179 = vector.broadcast %178 : vector<8x1xf32> to vector<8x8xf32>
    %180 = arith.subf %176, %179 : vector<8x8xf32>
    %181 = math.exp %180 : vector<8x8xf32>
    %cst_56 = arith.constant dense<0.000000e+00> : vector<8x33xf32>
    %182 = tpu.matmul %181, %142, %cst_56 {dimension_numbers = #tpu.dot_dimension_numbers<[1], [0], [0], [1], [0, 0, 1, 1], [], []>} : vector<8x8xf32>, vector<8x33xf32>, vector<8x33xf32> -> vector<8x33xf32>
    %183 = vector.extract_strided_slice %182 {offsets = [0, 16], sizes = [8, 8], strides = [1, 1]} : vector<8x33xf32> to vector<8x8xf32>
    %184 = vector.extract_strided_slice %182 {offsets = [0, 32], sizes = [8, 1], strides = [1, 1]} : vector<8x33xf32> to vector<8x1xf32>
    %185 = tpu.reciprocal %184 : vector<8x1xf32> -> vector<8x1xf32>
    %186 = vector.broadcast %185 : vector<8x1xf32> to vector<8x8xf32>
    %187 = arith.mulf %183, %186 : vector<8x8xf32>
    %188 = vector.extract_strided_slice %139 {offsets = [0, 24], sizes = [8, 8], strides = [1, 1]} : vector<8x32xf32> to vector<8x8xf32>
    %189 = vector.extract_strided_slice %140 {offsets = [0, 24], sizes = [8, 8], strides = [1, 1]} : vector<8x32xf32> to vector<8x8xf32>
    %cst_57 = arith.constant dense<0.000000e+00> : vector<8x8xf32>
    %190 = tpu.matmul %188, %189, %cst_57 {dimension_numbers = #tpu.dot_dimension_numbers<[1], [1], [0], [0], [0, 0, 1, 0], [], []>} : vector<8x8xf32>, vector<8x8xf32>, vector<8x8xf32> -> vector<8x8xf32>
    %191 = arith.addf %190, %135 : vector<8x8xf32>
    %cst_58 = arith.constant dense<0xFF800000> : vector<8xf32>
    %192 = vector.multi_reduction <maximumf>, %191, %cst_58 [1] : vector<8x8xf32> to vector<8xf32>
    %193 = vector.shape_cast %192 : vector<8xf32> to vector<8x1xf32>
    %194 = vector.broadcast %193 : vector<8x1xf32> to vector<8x8xf32>
    %195 = arith.subf %191, %194 : vector<8x8xf32>
    %196 = math.exp %195 : vector<8x8xf32>
    %cst_59 = arith.constant dense<0.000000e+00> : vector<8x33xf32>
    %197 = tpu.matmul %196, %142, %cst_59 {dimension_numbers = #tpu.dot_dimension_numbers<[1], [0], [0], [1], [0, 0, 1, 1], [], []>} : vector<8x8xf32>, vector<8x33xf32>, vector<8x33xf32> -> vector<8x33xf32>
    %198 = vector.extract_strided_slice %197 {offsets = [0, 24], sizes = [8, 8], strides = [1, 1]} : vector<8x33xf32> to vector<8x8xf32>
    %199 = vector.extract_strided_slice %197 {offsets = [0, 32], sizes = [8, 1], strides = [1, 1]} : vector<8x33xf32> to vector<8x1xf32>
    %200 = tpu.reciprocal %199 : vector<8x1xf32> -> vector<8x1xf32>
    %201 = vector.broadcast %200 : vector<8x1xf32> to vector<8x8xf32>
    %202 = arith.mulf %198, %201 : vector<8x8xf32>
    %203 = vector.extract_strided_slice %137 {offsets = [0, 0], sizes = [8, 64], strides = [1, 1]} : vector<32x64xf32> to vector<8x64xf32>
    %cst_60 = arith.constant dense<0.000000e+00> : vector<8x64xf32>
    %204 = tpu.matmul %157, %203, %cst_60 {dimension_numbers = #tpu.dot_dimension_numbers<[1], [0], [0], [1], [0, 0, 1, 1], [], []>} : vector<8x8xf32>, vector<8x64xf32>, vector<8x64xf32> -> vector<8x64xf32>
    %205 = vector.broadcast %138 : vector<1x64xf32> to vector<8x64xf32>
    %206 = arith.addf %205, %204 : vector<8x64xf32>
    %207 = vector.extract_strided_slice %137 {offsets = [8, 0], sizes = [8, 64], strides = [1, 1]} : vector<32x64xf32> to vector<8x64xf32>
    %cst_61 = arith.constant dense<0.000000e+00> : vector<8x64xf32>
    %208 = tpu.matmul %172, %207, %cst_61 {dimension_numbers = #tpu.dot_dimension_numbers<[1], [0], [0], [1], [0, 0, 1, 1], [], []>} : vector<8x8xf32>, vector<8x64xf32>, vector<8x64xf32> -> vector<8x64xf32>
    %209 = arith.addf %206, %208 : vector<8x64xf32>
    %210 = vector.extract_strided_slice %137 {offsets = [16, 0], sizes = [8, 64], strides = [1, 1]} : vector<32x64xf32> to vector<8x64xf32>
    %cst_62 = arith.constant dense<0.000000e+00> : vector<8x64xf32>
    %211 = tpu.matmul %187, %210, %cst_62 {dimension_numbers = #tpu.dot_dimension_numbers<[1], [0], [0], [1], [0, 0, 1, 1], [], []>} : vector<8x8xf32>, vector<8x64xf32>, vector<8x64xf32> -> vector<8x64xf32>
    %212 = arith.addf %209, %211 : vector<8x64xf32>
    %213 = vector.extract_strided_slice %137 {offsets = [24, 0], sizes = [8, 64], strides = [1, 1]} : vector<32x64xf32> to vector<8x64xf32>
    %cst_63 = arith.constant dense<0.000000e+00> : vector<8x64xf32>
    %214 = tpu.matmul %202, %213, %cst_63 {dimension_numbers = #tpu.dot_dimension_numbers<[1], [0], [0], [1], [0, 0, 1, 1], [], []>} : vector<8x8xf32>, vector<8x64xf32>, vector<8x64xf32> -> vector<8x64xf32>
    %215 = arith.addf %212, %214 : vector<8x64xf32>
    %216 = vector.extract_strided_slice %215 {offsets = [0, 0], sizes = [8, 32], strides = [1, 1]} : vector<8x64xf32> to vector<8x32xf32>
    %217 = vector.extract_strided_slice %215 {offsets = [0, 32], sizes = [8, 32], strides = [1, 1]} : vector<8x64xf32> to vector<8x32xf32>
    %218 = vector.shape_cast %4 : vector<8x1xi1> to vector<8x1xi1>
    %219 = vector.broadcast %218 : vector<8x1xi1> to vector<8x32xi1>
    %220 = arith.select %219, %216, %217 : vector<8x32xi1>, vector<8x32xf32>
    %221 = arith.addf %111, %220 : vector<8x32xf32>
    %cst_64 = arith.constant dense<0.000000e+00> : vector<8x1xf32>
    %222 = tpu.matmul %221, %5, %cst_64 {dimension_numbers = #tpu.dot_dimension_numbers<[1], [0], [0], [1], [0, 0, 1, 1], [], []>} : vector<8x32xf32>, vector<32x1xf32>, vector<8x1xf32> -> vector<8x1xf32>
    %223 = arith.mulf %221, %221 : vector<8x32xf32>
    %cst_65 = arith.constant dense<0.000000e+00> : vector<8x1xf32>
    %224 = tpu.matmul %223, %5, %cst_65 {dimension_numbers = #tpu.dot_dimension_numbers<[1], [0], [0], [1], [0, 0, 1, 1], [], []>} : vector<8x32xf32>, vector<32x1xf32>, vector<8x1xf32> -> vector<8x1xf32>
    %225 = vector.broadcast %222 : vector<8x1xf32> to vector<8x32xf32>
    %226 = arith.subf %221, %225 : vector<8x32xf32>
    %227 = arith.mulf %222, %222 : vector<8x1xf32>
    %228 = arith.subf %224, %227 : vector<8x1xf32>
    %cst_66 = arith.constant 9.99999974E-6 : f32
    %229 = vector.broadcast %cst_66 : f32 to vector<8x1xf32>
    %230 = arith.addf %228, %229 : vector<8x1xf32>
    %231 = math.rsqrt %230 : vector<8x1xf32>
    %232 = vector.broadcast %231 : vector<8x1xf32> to vector<8x32xf32>
    %233 = arith.mulf %226, %232 : vector<8x32xf32>
    %c64 = arith.constant 64 : index
    %c0_67 = arith.constant 0 : index
    %234 = vector.load %arg3[%c64, %c0_67] : memref<288x192xbf16, #tpu.memory_space<vmem>>, vector<32x96xbf16>
    %235 = arith.extf %234 : vector<32x96xbf16> to vector<32x96xf32>
    %cst_68 = arith.constant dense<0.000000e+00> : vector<8x96xf32>
    %236 = tpu.matmul %233, %235, %cst_68 {dimension_numbers = #tpu.dot_dimension_numbers<[1], [0], [0], [1], [0, 0, 1, 1], [], []>} : vector<8x32xf32>, vector<32x96xf32>, vector<8x96xf32> -> vector<8x96xf32>
    %c2 = arith.constant 2 : index
    %c0_69 = arith.constant 0 : index
    %237 = vector.load %arg4[%c2, %c0_69] : memref<8x128xf32, #tpu.memory_space<vmem>>, vector<1x96xf32>
    %238 = vector.broadcast %237 : vector<1x96xf32> to vector<8x96xf32>
    %239 = arith.addf %236, %238 : vector<8x96xf32>
    %c0_70 = arith.constant 0 : index
    %c16 = arith.constant 16 : index
    %c0_71 = arith.constant 0 : index
    %240 = vector.load %arg2[%c0_70, %c16, %c0_71] : memref<1x24x8xf32, #tpu.memory_space<vmem>>, vector<1x8x8xf32>
    %241 = vector.shape_cast %240 : vector<1x8x8xf32> to vector<8x8xf32>
    %c96_72 = arith.constant 96 : index
    %c96_73 = arith.constant 96 : index
    %242 = vector.load %arg3[%c96_72, %c96_73] : memref<288x192xbf16, #tpu.memory_space<vmem>>, vector<32x32xbf16>
    %243 = arith.extf %242 : vector<32x32xbf16> to vector<32x32xf32>
    %c3 = arith.constant 3 : index
    %c0_74 = arith.constant 0 : index
    %244 = vector.load %arg4[%c3, %c0_74] : memref<8x128xf32, #tpu.memory_space<vmem>>, vector<1x32xf32>
    %245 = vector.extract_strided_slice %239 {offsets = [0, 0], sizes = [8, 32], strides = [1, 1]} : vector<8x96xf32> to vector<8x32xf32>
    %246 = vector.extract_strided_slice %239 {offsets = [0, 32], sizes = [8, 32], strides = [1, 1]} : vector<8x96xf32> to vector<8x32xf32>
    %247 = vector.extract_strided_slice %239 {offsets = [0, 64], sizes = [8, 32], strides = [1, 1]} : vector<8x96xf32> to vector<8x32xf32>
    %248 = tpu.concatenate %247, %6 in 1 : vector<8x32xf32>, vector<8x1xf32> -> vector<8x33xf32>
    %249 = vector.extract_strided_slice %245 {offsets = [0, 0], sizes = [8, 8], strides = [1, 1]} : vector<8x32xf32> to vector<8x8xf32>
    %250 = vector.extract_strided_slice %246 {offsets = [0, 0], sizes = [8, 8], strides = [1, 1]} : vector<8x32xf32> to vector<8x8xf32>
    %cst_75 = arith.constant dense<0.000000e+00> : vector<8x8xf32>
    %251 = tpu.matmul %249, %250, %cst_75 {dimension_numbers = #tpu.dot_dimension_numbers<[1], [1], [0], [0], [0, 0, 1, 0], [], []>} : vector<8x8xf32>, vector<8x8xf32>, vector<8x8xf32> -> vector<8x8xf32>
    %252 = arith.addf %251, %241 : vector<8x8xf32>
    %cst_76 = arith.constant dense<0xFF800000> : vector<8xf32>
    %253 = vector.multi_reduction <maximumf>, %252, %cst_76 [1] : vector<8x8xf32> to vector<8xf32>
    %254 = vector.shape_cast %253 : vector<8xf32> to vector<8x1xf32>
    %255 = vector.broadcast %254 : vector<8x1xf32> to vector<8x8xf32>
    %256 = arith.subf %252, %255 : vector<8x8xf32>
    %257 = math.exp %256 : vector<8x8xf32>
    %cst_77 = arith.constant dense<0.000000e+00> : vector<8x33xf32>
    %258 = tpu.matmul %257, %248, %cst_77 {dimension_numbers = #tpu.dot_dimension_numbers<[1], [0], [0], [1], [0, 0, 1, 1], [], []>} : vector<8x8xf32>, vector<8x33xf32>, vector<8x33xf32> -> vector<8x33xf32>
    %259 = vector.extract_strided_slice %258 {offsets = [0, 0], sizes = [8, 8], strides = [1, 1]} : vector<8x33xf32> to vector<8x8xf32>
    %260 = vector.extract_strided_slice %258 {offsets = [0, 32], sizes = [8, 1], strides = [1, 1]} : vector<8x33xf32> to vector<8x1xf32>
    %261 = tpu.reciprocal %260 : vector<8x1xf32> -> vector<8x1xf32>
    %262 = vector.broadcast %261 : vector<8x1xf32> to vector<8x8xf32>
    %263 = arith.mulf %259, %262 : vector<8x8xf32>
    %264 = vector.extract_strided_slice %245 {offsets = [0, 8], sizes = [8, 8], strides = [1, 1]} : vector<8x32xf32> to vector<8x8xf32>
    %265 = vector.extract_strided_slice %246 {offsets = [0, 8], sizes = [8, 8], strides = [1, 1]} : vector<8x32xf32> to vector<8x8xf32>
    %cst_78 = arith.constant dense<0.000000e+00> : vector<8x8xf32>
    %266 = tpu.matmul %264, %265, %cst_78 {dimension_numbers = #tpu.dot_dimension_numbers<[1], [1], [0], [0], [0, 0, 1, 0], [], []>} : vector<8x8xf32>, vector<8x8xf32>, vector<8x8xf32> -> vector<8x8xf32>
    %267 = arith.addf %266, %241 : vector<8x8xf32>
    %cst_79 = arith.constant dense<0xFF800000> : vector<8xf32>
    %268 = vector.multi_reduction <maximumf>, %267, %cst_79 [1] : vector<8x8xf32> to vector<8xf32>
    %269 = vector.shape_cast %268 : vector<8xf32> to vector<8x1xf32>
    %270 = vector.broadcast %269 : vector<8x1xf32> to vector<8x8xf32>
    %271 = arith.subf %267, %270 : vector<8x8xf32>
    %272 = math.exp %271 : vector<8x8xf32>
    %cst_80 = arith.constant dense<0.000000e+00> : vector<8x33xf32>
    %273 = tpu.matmul %272, %248, %cst_80 {dimension_numbers = #tpu.dot_dimension_numbers<[1], [0], [0], [1], [0, 0, 1, 1], [], []>} : vector<8x8xf32>, vector<8x33xf32>, vector<8x33xf32> -> vector<8x33xf32>
    %274 = vector.extract_strided_slice %273 {offsets = [0, 8], sizes = [8, 8], strides = [1, 1]} : vector<8x33xf32> to vector<8x8xf32>
    %275 = vector.extract_strided_slice %273 {offsets = [0, 32], sizes = [8, 1], strides = [1, 1]} : vector<8x33xf32> to vector<8x1xf32>
    %276 = tpu.reciprocal %275 : vector<8x1xf32> -> vector<8x1xf32>
    %277 = vector.broadcast %276 : vector<8x1xf32> to vector<8x8xf32>
    %278 = arith.mulf %274, %277 : vector<8x8xf32>
    %279 = vector.extract_strided_slice %245 {offsets = [0, 16], sizes = [8, 8], strides = [1, 1]} : vector<8x32xf32> to vector<8x8xf32>
    %280 = vector.extract_strided_slice %246 {offsets = [0, 16], sizes = [8, 8], strides = [1, 1]} : vector<8x32xf32> to vector<8x8xf32>
    %cst_81 = arith.constant dense<0.000000e+00> : vector<8x8xf32>
    %281 = tpu.matmul %279, %280, %cst_81 {dimension_numbers = #tpu.dot_dimension_numbers<[1], [1], [0], [0], [0, 0, 1, 0], [], []>} : vector<8x8xf32>, vector<8x8xf32>, vector<8x8xf32> -> vector<8x8xf32>
    %282 = arith.addf %281, %241 : vector<8x8xf32>
    %cst_82 = arith.constant dense<0xFF800000> : vector<8xf32>
    %283 = vector.multi_reduction <maximumf>, %282, %cst_82 [1] : vector<8x8xf32> to vector<8xf32>
    %284 = vector.shape_cast %283 : vector<8xf32> to vector<8x1xf32>
    %285 = vector.broadcast %284 : vector<8x1xf32> to vector<8x8xf32>
    %286 = arith.subf %282, %285 : vector<8x8xf32>
    %287 = math.exp %286 : vector<8x8xf32>
    %cst_83 = arith.constant dense<0.000000e+00> : vector<8x33xf32>
    %288 = tpu.matmul %287, %248, %cst_83 {dimension_numbers = #tpu.dot_dimension_numbers<[1], [0], [0], [1], [0, 0, 1, 1], [], []>} : vector<8x8xf32>, vector<8x33xf32>, vector<8x33xf32> -> vector<8x33xf32>
    %289 = vector.extract_strided_slice %288 {offsets = [0, 16], sizes = [8, 8], strides = [1, 1]} : vector<8x33xf32> to vector<8x8xf32>
    %290 = vector.extract_strided_slice %288 {offsets = [0, 32], sizes = [8, 1], strides = [1, 1]} : vector<8x33xf32> to vector<8x1xf32>
    %291 = tpu.reciprocal %290 : vector<8x1xf32> -> vector<8x1xf32>
    %292 = vector.broadcast %291 : vector<8x1xf32> to vector<8x8xf32>
    %293 = arith.mulf %289, %292 : vector<8x8xf32>
    %294 = vector.extract_strided_slice %245 {offsets = [0, 24], sizes = [8, 8], strides = [1, 1]} : vector<8x32xf32> to vector<8x8xf32>
    %295 = vector.extract_strided_slice %246 {offsets = [0, 24], sizes = [8, 8], strides = [1, 1]} : vector<8x32xf32> to vector<8x8xf32>
    %cst_84 = arith.constant dense<0.000000e+00> : vector<8x8xf32>
    %296 = tpu.matmul %294, %295, %cst_84 {dimension_numbers = #tpu.dot_dimension_numbers<[1], [1], [0], [0], [0, 0, 1, 0], [], []>} : vector<8x8xf32>, vector<8x8xf32>, vector<8x8xf32> -> vector<8x8xf32>
    %297 = arith.addf %296, %241 : vector<8x8xf32>
    %cst_85 = arith.constant dense<0xFF800000> : vector<8xf32>
    %298 = vector.multi_reduction <maximumf>, %297, %cst_85 [1] : vector<8x8xf32> to vector<8xf32>
    %299 = vector.shape_cast %298 : vector<8xf32> to vector<8x1xf32>
    %300 = vector.broadcast %299 : vector<8x1xf32> to vector<8x8xf32>
    %301 = arith.subf %297, %300 : vector<8x8xf32>
    %302 = math.exp %301 : vector<8x8xf32>
    %cst_86 = arith.constant dense<0.000000e+00> : vector<8x33xf32>
    %303 = tpu.matmul %302, %248, %cst_86 {dimension_numbers = #tpu.dot_dimension_numbers<[1], [0], [0], [1], [0, 0, 1, 1], [], []>} : vector<8x8xf32>, vector<8x33xf32>, vector<8x33xf32> -> vector<8x33xf32>
    %304 = vector.extract_strided_slice %303 {offsets = [0, 24], sizes = [8, 8], strides = [1, 1]} : vector<8x33xf32> to vector<8x8xf32>
    %305 = vector.extract_strided_slice %303 {offsets = [0, 32], sizes = [8, 1], strides = [1, 1]} : vector<8x33xf32> to vector<8x1xf32>
    %306 = tpu.reciprocal %305 : vector<8x1xf32> -> vector<8x1xf32>
    %307 = vector.broadcast %306 : vector<8x1xf32> to vector<8x8xf32>
    %308 = arith.mulf %304, %307 : vector<8x8xf32>
    %309 = vector.extract_strided_slice %243 {offsets = [0, 0], sizes = [8, 32], strides = [1, 1]} : vector<32x32xf32> to vector<8x32xf32>
    %cst_87 = arith.constant dense<0.000000e+00> : vector<8x32xf32>
    %310 = tpu.matmul %263, %309, %cst_87 {dimension_numbers = #tpu.dot_dimension_numbers<[1], [0], [0], [1], [0, 0, 1, 1], [], []>} : vector<8x8xf32>, vector<8x32xf32>, vector<8x32xf32> -> vector<8x32xf32>
    %311 = vector.broadcast %244 : vector<1x32xf32> to vector<8x32xf32>
    %312 = arith.addf %311, %310 : vector<8x32xf32>
    %313 = vector.extract_strided_slice %243 {offsets = [8, 0], sizes = [8, 32], strides = [1, 1]} : vector<32x32xf32> to vector<8x32xf32>
    %cst_88 = arith.constant dense<0.000000e+00> : vector<8x32xf32>
    %314 = tpu.matmul %278, %313, %cst_88 {dimension_numbers = #tpu.dot_dimension_numbers<[1], [0], [0], [1], [0, 0, 1, 1], [], []>} : vector<8x8xf32>, vector<8x32xf32>, vector<8x32xf32> -> vector<8x32xf32>
    %315 = arith.addf %312, %314 : vector<8x32xf32>
    %316 = vector.extract_strided_slice %243 {offsets = [16, 0], sizes = [8, 32], strides = [1, 1]} : vector<32x32xf32> to vector<8x32xf32>
    %cst_89 = arith.constant dense<0.000000e+00> : vector<8x32xf32>
    %317 = tpu.matmul %293, %316, %cst_89 {dimension_numbers = #tpu.dot_dimension_numbers<[1], [0], [0], [1], [0, 0, 1, 1], [], []>} : vector<8x8xf32>, vector<8x32xf32>, vector<8x32xf32> -> vector<8x32xf32>
    %318 = arith.addf %315, %317 : vector<8x32xf32>
    %319 = vector.extract_strided_slice %243 {offsets = [24, 0], sizes = [8, 32], strides = [1, 1]} : vector<32x32xf32> to vector<8x32xf32>
    %cst_90 = arith.constant dense<0.000000e+00> : vector<8x32xf32>
    %320 = tpu.matmul %308, %319, %cst_90 {dimension_numbers = #tpu.dot_dimension_numbers<[1], [0], [0], [1], [0, 0, 1, 1], [], []>} : vector<8x8xf32>, vector<8x32xf32>, vector<8x32xf32> -> vector<8x32xf32>
    %321 = arith.addf %318, %320 : vector<8x32xf32>
    %cst_91 = arith.constant 0.000000e+00 : f32
    %322 = vector.shape_cast %4 : vector<8x1xi1> to vector<8x1xi1>
    %323 = vector.broadcast %322 : vector<8x1xi1> to vector<8x32xi1>
    %324 = vector.broadcast %cst_91 : f32 to vector<8x32xf32>
    %325 = arith.select %323, %324, %321 : vector<8x32xi1>, vector<8x32xf32>
    %326 = arith.addf %221, %325 : vector<8x32xf32>
    %cst_92 = arith.constant dense<0.000000e+00> : vector<8x1xf32>
    %327 = tpu.matmul %326, %5, %cst_92 {dimension_numbers = #tpu.dot_dimension_numbers<[1], [0], [0], [1], [0, 0, 1, 1], [], []>} : vector<8x32xf32>, vector<32x1xf32>, vector<8x1xf32> -> vector<8x1xf32>
    %328 = arith.mulf %326, %326 : vector<8x32xf32>
    %cst_93 = arith.constant dense<0.000000e+00> : vector<8x1xf32>
    %329 = tpu.matmul %328, %5, %cst_93 {dimension_numbers = #tpu.dot_dimension_numbers<[1], [0], [0], [1], [0, 0, 1, 1], [], []>} : vector<8x32xf32>, vector<32x1xf32>, vector<8x1xf32> -> vector<8x1xf32>
    %330 = vector.broadcast %327 : vector<8x1xf32> to vector<8x32xf32>
    %331 = arith.subf %326, %330 : vector<8x32xf32>
    %332 = arith.mulf %327, %327 : vector<8x1xf32>
    %333 = arith.subf %329, %332 : vector<8x1xf32>
    %cst_94 = arith.constant 9.99999974E-6 : f32
    %334 = vector.broadcast %cst_94 : f32 to vector<8x1xf32>
    %335 = arith.addf %333, %334 : vector<8x1xf32>
    %336 = math.rsqrt %335 : vector<8x1xf32>
    %337 = vector.broadcast %336 : vector<8x1xf32> to vector<8x32xf32>
    %338 = arith.mulf %331, %337 : vector<8x32xf32>
    %c128 = arith.constant 128 : index
    %c0_95 = arith.constant 0 : index
    %339 = vector.load %arg3[%c128, %c0_95] : memref<288x192xbf16, #tpu.memory_space<vmem>>, vector<32x128xbf16>
    %340 = arith.extf %339 : vector<32x128xbf16> to vector<32x128xf32>
    %cst_96 = arith.constant dense<0.000000e+00> : vector<8x128xf32>
    %341 = tpu.matmul %338, %340, %cst_96 {dimension_numbers = #tpu.dot_dimension_numbers<[1], [0], [0], [1], [0, 0, 1, 1], [], []>} : vector<8x32xf32>, vector<32x128xf32>, vector<8x128xf32> -> vector<8x128xf32>
    %c5 = arith.constant 5 : index
    %c0_97 = arith.constant 0 : index
    %342 = vector.load %arg4[%c5, %c0_97] : memref<8x128xf32, #tpu.memory_space<vmem>>, vector<1x128xf32>
    %343 = vector.broadcast %342 : vector<1x128xf32> to vector<8x128xf32>
    %344 = arith.addf %341, %343 : vector<8x128xf32>
    %cst_98 = arith.constant 0.000000e+00 : f32
    %345 = vector.broadcast %cst_98 : f32 to vector<8x128xf32>
    %346 = arith.maximumf %344, %345 : vector<8x128xf32>
    %c160 = arith.constant 160 : index
    %c0_99 = arith.constant 0 : index
    %347 = vector.load %arg3[%c160, %c0_99] : memref<288x192xbf16, #tpu.memory_space<vmem>>, vector<128x64xbf16>
    %348 = arith.extf %347 : vector<128x64xbf16> to vector<128x64xf32>
    %cst_100 = arith.constant dense<0.000000e+00> : vector<8x64xf32>
    %349 = tpu.matmul %346, %348, %cst_100 {dimension_numbers = #tpu.dot_dimension_numbers<[1], [0], [0], [1], [0, 0, 1, 1], [], []>} : vector<8x128xf32>, vector<128x64xf32>, vector<8x64xf32> -> vector<8x64xf32>
    %c6 = arith.constant 6 : index
    %c0_101 = arith.constant 0 : index
    %350 = vector.load %arg4[%c6, %c0_101] : memref<8x128xf32, #tpu.memory_space<vmem>>, vector<1x64xf32>
    %351 = vector.broadcast %350 : vector<1x64xf32> to vector<8x64xf32>
    %352 = arith.addf %349, %351 : vector<8x64xf32>
    %353 = vector.extract_strided_slice %352 {offsets = [0, 0], sizes = [8, 32], strides = [1, 1]} : vector<8x64xf32> to vector<8x32xf32>
    %354 = vector.extract_strided_slice %352 {offsets = [0, 32], sizes = [8, 32], strides = [1, 1]} : vector<8x64xf32> to vector<8x32xf32>
    %355 = vector.shape_cast %4 : vector<8x1xi1> to vector<8x1xi1>
    %356 = vector.broadcast %355 : vector<8x1xi1> to vector<8x32xi1>
    %357 = arith.select %356, %353, %354 : vector<8x32xi1>, vector<8x32xf32>
    %358 = arith.addf %326, %357 : vector<8x32xf32>
    %c0_102 = arith.constant 0 : index
    %c0_103 = arith.constant 0 : index
    %c0_104 = arith.constant 0 : index
    %359 = vector.load %arg6[%c0_102, %c0_103, %c0_104] : memref<1x8x32xf32, #tpu.memory_space<vmem>>, vector<1x8x32xf32>
    %360 = vector.shape_cast %359 : vector<1x8x32xf32> to vector<8x32xf32>
    %361 = vector.shape_cast %358 : vector<8x32xf32> to vector<1x8x32xf32>
    tpu.vector_store %arg6[%c0_102, %c0_103, %c0_104], %361 {strides = array<i32>} : memref<1x8x32xf32, #tpu.memory_space<vmem>>, vector<1x8x32xf32>,
    return
  }
  func.func @transform_0(%arg0: i32) -> (i32, i32, i32) {
    %c0_i32 = arith.constant 0 : i32
    %c0_i32_0 = arith.constant 0 : i32
    %c0_i32_1 = arith.constant 0 : i32
    return %arg0, %c0_i32, %c0_i32_0 : i32, i32, i32
  }
  func.func @transform_1(%arg0: i32) -> (i32, i32, i32) {
    %c0_i32 = arith.constant 0 : i32
    %c0_i32_0 = arith.constant 0 : i32
    %c0_i32_1 = arith.constant 0 : i32
    return %arg0, %c0_i32, %c0_i32_0 : i32, i32, i32
  }
  func.func @transform_2(%arg0: i32) -> (i32, i32) {
    %c0_i32 = arith.constant 0 : i32
    %c0_i32_0 = arith.constant 0 : i32
    %c0_i32_1 = arith.constant 0 : i32
    return %c0_i32, %c0_i32_0 : i32, i32
  }
  func.func @transform_3(%arg0: i32) -> (i32, i32) {
    %c0_i32 = arith.constant 0 : i32
    %c0_i32_0 = arith.constant 0 : i32
    %c0_i32_1 = arith.constant 0 : i32
    return %c0_i32, %c0_i32_0 : i32, i32
  }
  func.func @transform_4(%arg0: i32) -> (i32, i32) {
    %c0_i32 = arith.constant 0 : i32
    %c0_i32_0 = arith.constant 0 : i32
    %c0_i32_1 = arith.constant 0 : i32
    return %c0_i32, %c0_i32_0 : i32, i32
  }
  func.func @transform_5(%arg0: i32) -> (i32, i32, i32) {
    %c0_i32 = arith.constant 0 : i32
    %c0_i32_0 = arith.constant 0 : i32
    %c0_i32_1 = arith.constant 0 : i32
    return %arg0, %c0_i32, %c0_i32_0 : i32, i32, i32
  }
}

</mosaic_0001>

<bundles_post_ra>
// kernel: decoder_layer_apply.1
= control target key start
LH: loop header
LB: loop body
LE: loop exit
PB: predicated region body
PF: predicated region fallthrough
CT: control target
= control target key end

     0   :  { %10 = vsyncpa [#allocation3], 0  ;;  %s2443_s18 = smov 0   ;;  %s2834_s0 = inlined_call_operand.vmem [shape: f32[2,8,32], index: 0, kind: input, shape index: {}]   ;;  %s2835_s1 = inlined_call_operand.vmem [shape: f32[2,24,8], index: 1, kind: input, shape index: {}]   ;;  %s2836_s2 = inlined_call_operand.hbm [shape: bf16[288,192], index: 2, kind: input, shape index: {}]   ;;  %s2837_s3 = inlined_call_operand.vmem [shape: f32[8,128], index: 3, kind: input, shape index: {}]   ;;  %s2838_s4 = inlined_call_operand.vmem [shape: f32[16,128], index: 4, kind: input, shape index: {}]   ;;  %s2839_s5 = inlined_call_operand.vmem [shape: f32[2,8,32], index: 5, kind: output, shape index: {}]  }
   0x1 LB: > { %s173_s21 = sshll.u32 %s2836_s2, 4  ;;  %s2157_s22 = sadd.s32 4294967295, %s2396_s18   ;;  %s2396_s18 = sphi %s2443_s18, %s16_s18   ;;  %s174_s21 = int_to_ptr.hbm [resolvable:$true] %s173_s21 }
   0x2   : > { %p2159_p0 = scmp.ge.s32.totalorder %s2396_s18, 1  ;;  %p162_p1 = scmp.lt.s32.totalorder %s2396_s18, 3 }
   0x3   : > { %p2239_p2 = scmp.eq.s32.totalorder %s2157_s22, 0  ;;  %s2398_s23 = smov [#allocation2]  }
   0x4   : > { %p163_p3 = pnand %p2159_p0, %p162_p1  ;;  %s175_s24 = sshll.u32 %s2398_s23, 4  ;;  %s176_s24 = int_to_ptr.vmem [resolvable:$true] %s175_s24 }
   0x5   : > { %s2399_s25 = smov 128   ;;  %s2400_s26 = smov 8  }
   0x6   : > { %p2235_p4 = pneg %p163_p3  ;;  %212 = sbr.rel (%p163_p3) target bundleno = 4740 (0x1284), region = 40 }
   0x8   : > { %p2236_p5 = pnand %p2239_p2, %p2235_p4 }
   0xa   : > { %2238 = dma.hbm_to_vmem [thread:$0]  (!%p2236_p5), %s174_s21, 4608, %s176_s24, [#allocation3], %s2399_s25, %s2399_s25, %s2400_s26  }
   0xb   : > { %2391 = dma.done.wait (%p2239_p2), [#allocation3], 4608  }
   0xc   : > { %2393 = vsyncadd (%p2239_p2), [#allocation3], 4294962688  ;;  %p244_p6 = scmp.lt.s32.totalorder %s2157_s22, 1  ;;  %v2401_v0 = vmov 0.03125   ;;  %v2402_v1 = vmov 0   ;;  %vm261_vm0 = vcmask 261120  }
   0xd   : > { %277 = vmatpush.msra.mxu1 %v2401_v0  ;;  %2264 = vset.pattern.permute.xlu0 %v2402_v1  ;;  %v334_v4 = vld [vmem:[%s2838_s4] sm:$0xff]  ;;  %s2403_s8 = smov 96   ;;  %v344_v17 = vld [vmem:[#allocation2 + $0x38] sm:$0xf]  ;;  %v343_v19 = vld [vmem:[#allocation2 + $0x30] sm:$0xf] }
   0xe   : > { %s2843_s22 = smov (!%p244_p6, %s2157_s22), 1  ;;  %337 = vrot.lane.b32.xlu1 %v334_v4, %s2403_s8  ;;  %v348_v18 = vunpack.c.l.bf16 %v344_v17  ;;  %v347_v20 = vunpack.c.l.bf16 %v343_v19  ;;  %v342_v21 = vld [vmem:[#allocation2 + $0x28] sm:$0xf]  ;;  %v341_v23 = vld [vmem:[#allocation2 + $0x20] sm:$0xf]  ;;  %s2404_s11 = smov 80  }
   0xf   : > { %278 = vmatpush.msra.mxu1 %v2401_v0  ;;  %s2164_s27 = sshll.u32 %s2843_s22, 3  ;;  %v346_v22 = vunpack.c.l.bf16 %v342_v21  ;;  %v345_v24 = vunpack.c.l.bf16 %v341_v23  ;;  %v2293_v32 = vld [vmem:[%s2837_s3] ss:$0 sm:$0xff]  ;;  %s2405_s12 = smov 88   ;;  %vm391_vm4 = vcmask 64512  }
  0x10   : > { %s247_s30 = scalar_lea.vmem %s2834_s0, %s2164_s27  ;;  %366 = vmatpush.msra.mxu2 %v348_v18  ;;  %s2406_s13 = smov 104  }
  0x11   : > { %279 = vmatpush.msra.mxu1 %v2401_v0  ;;  %v2467_v2 = vld [vmem:[%s247_s30] sm:$0xff]  ;;  %s2407_s14 = smov 120   ;;  %s2408_s15 = smov 112  }
  0x12   : > { %v285_v3 = vmul.f32 %v2467_v2, %v2467_v2  ;;  %367 = vmatpush.msra.mxu2 %v347_v20  ;;  %s2409_s16 = smov 72   ;;  %s2230_s17 = smul.u32 24, %s2843_s22 }
  0x13   : > { %280 = vmatpush.msra.mxu1 %v2401_v0  ;;  %s2410_s23 = smov 64   ;;  %s2412_s26 = smov 32  }
  0x14   : > { %2167 = vmatmul.msk.f32.vlgmr.msra.gmra.mxu1 %vm261_vm0, %v2467_v2  ;;  %368 = vmatpush.msra.mxu2 %v346_v22  ;;  %s2506_s21 = scalar_lea.vmem %s2835_s1, %s2230_s17  ;;  %s256_s19 = scalar_lea.vmem %s2839_s5, %s2164_s27 }
  0x15   : > { %301 = vmatpush.msrb.mxu1 %v2401_v0  ;;  %v374_v42 = vld [vmem:[%s2506_s21] sm:$0xff] }
  0x16   : > { %369 = vmatpush.msra.mxu2 %v345_v24 }
  0x17   : > { %302 = vmatpush.msrb.mxu1 %v2401_v0 }
  0x19   : > { %303 = vmatpush.msrb.mxu1 %v2401_v0 }
  0x1b   : > { %304 = vmatpush.msrb.mxu1 %v2401_v0 }
  0x1c   : > { %2168 = vmatmul.msk.f32.vlgmr.msrb.gmra.mxu1 %vm261_vm0, %v285_v3 }
  0x80   : > { %v338_v29 = vpop.permute.xlu1 %337 }
  0x91   : > { %v282_v5 = vpop.f32.mrf.mxu1 }
  0x92   : > { %311 = vperm.xlu0 %2264, %v282_v5   ;;  %v315_v6 = vmul.f32 %v282_v5, %v282_v5 }
  0x99   : > { %v306_v7 = vpop.f32.mrf.mxu1 }
  0x9a   : > { %v316_v8 = vsub.f32 %v306_v7, %v315_v6 }
  0x9c   : > { %v317_v9 = vadd.f32 1e-05, %v316_v8 }
  0x9e   : > { %2300 = vrsqrt.f32 %v317_v9  ;;  %vm324_vm2 = vweird.f32 %v317_v9 }
  0xa4   : > { %v2301_v10 = vpop.eup %2300 }
  0xa5   : > { %v319_v11 = vmul.f32 %v2301_v10, %v317_v9  ;;  %vm325_vm1 = vweird.f32 %v2301_v10 }
  0xa6   : > { %vm326_vm3 = vmor %vm324_vm2, %vm325_vm1 }
  0xa7   : > { %v320_v12 = vmul.f32 %v2301_v10, %v319_v11 }
  0xa9   : > { %v321_v13 = vmul.f32 0.5, %v320_v12  ;;  %v2411_v12 = vmov 32  }
  0xaa   : > { %2267 = vset.pattern.permute.xlu2 %v2411_v12  ;;  %2266 = vset.pattern.permute.xlu1 %v2411_v12 }
  0xab   : > { %v322_v14 = vsub.f32 1.5, %v321_v13 }
  0xad   : > { %v323_v15 = vmul.f32 %v2301_v10, %v322_v14 }
  0xaf   : > { %v327_v16 = vsel %vm326_vm3, %v2301_v10, %v323_v15 }
  0xb0   : > { %330 = vperm.xlu0 %2264, %v327_v16  }
  0xb8   : > { %2265 = vset.pattern.permute.xlu0 %v2411_v12 }
 0x104   : > { %v312_v25 = vpop.permute.xlu0 %311 }
 0x105   : > { %v314_v26 = vsub.f32 %v2467_v2, %v312_v25 }
 0x122   : > { %v331_v27 = vpop.permute.xlu0 %330 }
 0x123   : > { %v333_v28 = vmul.f32 %v331_v27, %v314_v26 }
 0x125   : > { %v335_v30 = vmul.f32 %v334_v4, %v333_v28 }
 0x127   : > { %v340_v31 = vadd.f32 %v338_v29, %v335_v30 }
 0x129   : > { %2169 = vmatmul.msk.f32.vlgmr.msra.gmra.mxu2 %vm261_vm0, %v340_v31 }
 0x1ac   : > { %v371_v33 = vpop.f32.mrf.mxu2 }
 0x1ad   : > { %v372_v34 = vadd.f32 %v2293_v32, %v371_v33 }
 0x1af   : > { %544 = vrot.lane.b32.xlu0 %v372_v34, %s2404_s11  ;;  %467 = vrot.lane.b32.xlu2 %v372_v34, %s2405_s12 }
 0x1b0   : > { %389 = vrot.lane.b32.xlu1 %v372_v34, %s2403_s8 }
 0x1b7   : > { %619 = vrot.lane.b32.xlu0 %v372_v34, %s2406_s13  ;;  %465 = vrot.lane.b32.xlu2 %v372_v34, %s2407_s14 }
 0x1b8   : > { %542 = vrot.lane.b32.xlu1 %v372_v34, %s2408_s15 }
 0x1bf   : > { %621 = vrot.lane.b32.xlu2 %v372_v34, %s2409_s16 }
 0x209   : > { %v468_v35 = vpop.permute.xlu2 %467 }
 0x20a   : > { %2173 = vmatpush.xpose.msk.msrb.mxu2 %vm391_vm4, %v468_v35 }
 0x211   : > { %v466_v36 = vpop.permute.xlu2 %465 }
 0x212   : > { %2174 = vmatmul.msk.f32.vlgmr.msrb.gmra.mxu2 %vm391_vm4, %v466_v36 }
 0x219   : > { %v622_v37 = vpop.permute.xlu2 %621 }
 0x21a   : > { %2179 = vmatpush.xpose.msk.msra.mxu0 %vm391_vm4, %v622_v37 }
 0x221   : > { %v545_v38 = vpop.permute.xlu0 %544 }
 0x222   : > { %v390_v39 = vpop.permute.xlu1 %389  ;;  %2176 = vmatpush.xpose.msk.msra.mxu2 %vm391_vm4, %v545_v38 }
 0x223   : > { %2170 = vmatpush.xpose.msk.msra.mxu3 %vm391_vm4, %v390_v39 }
 0x226   : > { %2171 = vmatmul.msk.f32.vlgmr.msra.gmra.mxu3 %vm391_vm4, %v372_v34 }
 0x229   : > { %v620_v40 = vpop.permute.xlu0 %619 }
 0x22a   : > { %v543_v41 = vpop.permute.xlu1 %542  ;;  %2180 = vmatmul.msk.f32.vlgmr.msra.gmra.mxu0 %vm391_vm4, %v620_v40 }
 0x22b   : > { %2177 = vmatmul.msk.f32.vlgmr.msra.gmra.mxu2 %vm391_vm4, %v543_v41 }
 0x295   : > { %v490_v43 = vpop.f32.mrf.mxu2 }
 0x296   : > { %v491_v44 = vadd.f32 %v490_v43, %v374_v42 }
 0x298   : > { %v493_v45 = vsel %vm391_vm4, %v491_v44, -inf }
 0x299   : > { %494 = vmax.xlane.f32.xlu2 %v493_v45 }
 0x2a7   : > { %v644_v49 = vpop.f32.mrf.mxu0 }
 0x2a8   : > { %v645_v52 = vadd.f32 %v644_v49, %v374_v42 }
 0x2a9   : > { %v413_v46 = vpop.f32.mrf.mxu3 }
 0x2aa   : > { %v414_v47 = vadd.f32 %v413_v46, %v374_v42  ;;  %v647_v54 = vsel %vm391_vm4, %v645_v52, -inf }
 0x2ac   : > { %v416_v48 = vsel %vm391_vm4, %v414_v47, -inf }
 0x2ad   : > { %417 = vmax.xlane.f32.xlu1 %v416_v48 }
 0x2ae   : > { %v567_v50 = vpop.f32.mrf.mxu2 }
 0x2af   : > { %v568_v51 = vadd.f32 %v567_v50, %v374_v42 }
 0x2b1   : > { %385 = vrot.lane.b32.xlu2 %v372_v34, %s2410_s23  ;;  %v570_v53 = vsel %vm391_vm4, %v568_v51, -inf }
 0x2b2   : > { %571 = vmax.xlane.f32.xlu0 %v570_v53 }
 0x2b5   : > { %648 = vmax.xlane.f32.xlu1 %v647_v54 }
 0x30c   : > { %v495_v55 = vpop.xlane.xlu2 %494 }
 0x30d   : > { %v496_v56 = vsub.f32 %v491_v44, %v495_v55 }
 0x30f   : > { %v497_v57 = vmul.f32 1.442695, %v496_v56 }
 0x311   : > { %2302 = vpow2.f32 %v497_v57  ;;  %v375_v57 = vld [vmem:[#allocation2 + $0x60] sm:$0xf] }
 0x314   : > { %v386_v58 = vpop.permute.xlu2 %385 }
 0x315   : > { %v388_v59 = vsel %vm261_vm0, %v386_v58, 1.0  ;;  %v2552_v58 = vunpack.c.l.bf16 %v375_v57 }
 0x316   : > { %440 = vmatpush.msrb.mxu3 %v388_v59  ;;  %517 = vmatpush.msra.mxu1 %v388_v59 }
 0x317   : > { %v2303_v60 = vpop.eup %2302  ;;  %714 = vmatpush.msrb.mxu2 %v2552_v58 }
 0x318   : > { %594 = vmatpush.msra.mxu3 %v388_v59  ;;  %671 = vmatpush.msrb.mxu1 %v388_v59 }
 0x319   : > { %2175 = vmatmul.msk.f32.vlgmr.msra.gmra.mxu1 %vm391_vm4, %v2303_v60  ;;  %815 = vmatpush.msra.mxu2 %v2401_v0 }
 0x31b   : > { %816 = vmatpush.msra.mxu2 %v2401_v0 }
 0x31d   : > { %817 = vmatpush.msra.mxu2 %v2401_v0 }
 0x31f   : > { %818 = vmatpush.msra.mxu2 %v2401_v0 }
 0x320   : > { %v418_v61 = vpop.xlane.xlu1 %417 }
 0x321   : > { %v419_v62 = vsub.f32 %v414_v47, %v418_v61 }
 0x323   : > { %v420_v63 = vmul.f32 1.442695, %v419_v62  ;;  %v376_v62 = vld [vmem:[#allocation2 + $0x68] sm:$0xf] }
 0x325   : > { %2304 = vpow2.f32 %v420_v63  ;;  %v572_v3 = vpop.xlane.xlu0 %571  ;;  %v2561_v63 = vunpack.c.l.bf16 %v376_v62 }
 0x326   : > { %v573_v4 = vsub.f32 %v568_v51, %v572_v3 }
 0x328   : > { %v574_v5 = vmul.f32 1.442695, %v573_v4  ;;  %v649_v6 = vpop.xlane.xlu1 %648 }
 0x329   : > { %v650_v7 = vsub.f32 %v645_v52, %v649_v6 }
 0x32a   : > { %2306 = vpow2.f32 %v574_v5 }
 0x32b   : > { %v2305_v8 = vpop.eup %2304  ;;  %v651_v9 = vmul.f32 1.442695, %v650_v7 }
 0x32c   : > { %2172 = vmatmul.msk.f32.vlgmr.msrb.gmra.mxu3 %vm391_vm4, %v2305_v8  ;;  %v378_v8 = vld [vmem:[#allocation2 + $0x78] sm:$0xf] }
 0x32d   : > { %2308 = vpow2.f32 %v651_v9  ;;  %741 = vmatpush.msrb.mxu3 %v2561_v63  ;;  %v2574_v9 = vunpack.c.l.bf16 %v378_v8 }
 0x32f   : > { %793 = vmatpush.msra.mxu1 %v2574_v9 }
 0x330   : > { %v2307_v10 = vpop.eup %2306 }
 0x333   : > { %v2309_v11 = vpop.eup %2308 }
 0x334   : > { %2178 = vmatmul.msk.f32.vlgmr.msra.gmra.mxu3 %vm391_vm4, %v2307_v10  ;;  %2181 = vmatmul.msk.f32.vlgmr.msrb.gmra.mxu1 %vm391_vm4, %v2309_v11  ;;  %v377_v10 = vld [vmem:[#allocation2 + $0x70] sm:$0xf] }
 0x335   : > { %839 = vmatpush.msra.mxu3 %v2401_v0  ;;  %v2577_v11 = vunpack.c.l.bf16 %v377_v10 }
 0x337   : > { %840 = vmatpush.msra.mxu3 %v2401_v0  ;;  %767 = vmatpush.msrb.mxu0 %v2577_v11 }
 0x339   : > { %841 = vmatpush.msra.mxu3 %v2401_v0 }
 0x33b   : > { %842 = vmatpush.msra.mxu3 %v2401_v0 }
 0x396   : > { %v2522_v13 = vpop.f32.mrf.mxu1 }
 0x397   : > { %2310 = vrcp.f32 %v2522_v13  ;;  %v533_v17 = vand.u32 2147483648, %v2522_v13  ;;  %v531_v19 = vand.u32 2147483647, %v2522_v13  ;;  %vm527_vm6 = vweird.f32 %v2522_v13 }
 0x399   : > { %v534_v21 = vor.u32 1.1754944e-38, %v533_v17  ;;  %vm532_vm8 = vcmp.eq.f32.partialorder %v531_v19, 8.507059e+37 }
 0x39d   : > { %v2311_v14 = vpop.eup %2310 }
 0x39e   : > { %v523_v15 = vmul.f32 %v2311_v14, %v2522_v13  ;;  %vm528_vm5 = vweird.f32 %v2311_v14 }
 0x39f   : > { %vm529_vm7 = vmor %vm527_vm6, %vm528_vm5 }
 0x3a0   : > { %v524_v16 = vsub.f32 1.0, %v523_v15 }
 0x3a2   : > { %v525_v18 = vmul.f32 %v2311_v14, %v524_v16  ;;  %v2294_v16 = vld [vmem:[%s2837_s3 + $0x1] ss:$0 sm:$0xff] }
 0x3a4   : > { %v526_v20 = vadd.f32 %v2311_v14, %v525_v18 }
 0x3a6   : > { %v530_v22 = vsel %vm529_vm7, %v2311_v14, %v526_v20 }
 0x3a7   : > { %v535_v23 = vsel %vm532_vm8, %v534_v21, %v530_v22 }
 0x3a8   : > { %538 = vperm.xlu0 %2265, %v535_v23  }
 0x3af   : > { %v2529_v24 = vpop.f32.mrf.mxu3 }
 0x3b0   : > { %2269 = vset.pattern.permute.xlu0 %v2402_v1  ;;  %2312 = vrcp.f32 %v2529_v24  ;;  %vm450_vm15 = vweird.f32 %v2529_v24  ;;  %v456_v48 = vand.u32 2147483648, %v2529_v24  ;;  %v454_v50 = vand.u32 2147483647, %v2529_v24 }
 0x3b1   : > { %v2533_v25 = vpop.f32.mrf.mxu1 }
 0x3b2   : > { %2314 = vrcp.f32 %v2533_v25  ;;  %v687_v33 = vand.u32 2147483648, %v2533_v25  ;;  %v685_v35 = vand.u32 2147483647, %v2533_v25  ;;  %vm681_vm10 = vweird.f32 %v2533_v25 }
 0x3b3   : > { %v457_v55 = vor.u32 1.1754944e-38, %v456_v48  ;;  %vm455_vm6 = vcmp.eq.f32.partialorder %v454_v50, 8.507059e+37 }
 0x3b4   : > { %v688_v40 = vor.u32 1.1754944e-38, %v687_v33  ;;  %vm686_vm12 = vcmp.eq.f32.partialorder %v685_v35, 8.507059e+37 }
 0x3b6   : > { %v2313_v26 = vpop.eup %2312 }
 0x3b7   : > { %v446_v27 = vmul.f32 %v2313_v26, %v2529_v24  ;;  %v2537_v28 = vpop.f32.mrf.mxu3  ;;  %vm451_vm13 = vweird.f32 %v2313_v26 }
 0x3b8   : > { %v2315_v29 = vpop.eup %2314  ;;  %2316 = vrcp.f32 %v2537_v28  ;;  %v610_v44 = vand.u32 2147483648, %v2537_v28  ;;  %v608_v46 = vand.u32 2147483647, %v2537_v28  ;;  %vm604_vm1 = vweird.f32 %v2537_v28  ;;  %vm452_vm2 = vmor %vm450_vm15, %vm451_vm13 }
 0x3b9   : > { %v677_v30 = vmul.f32 %v2315_v29, %v2533_v25  ;;  %v447_v31 = vsub.f32 1.0, %v446_v27  ;;  %vm682_vm9 = vweird.f32 %v2315_v29 }
 0x3ba   : > { %vm683_vm11 = vmor %vm681_vm10, %vm682_vm9  ;;  %v611_v51 = vor.u32 1.1754944e-38, %v610_v44  ;;  %vm609_vm5 = vcmp.eq.f32.partialorder %v608_v46, 8.507059e+37 }
 0x3bb   : > { %v678_v32 = vsub.f32 1.0, %v677_v30  ;;  %v448_v39 = vmul.f32 %v2313_v26, %v447_v31 }
 0x3bd   : > { %v679_v34 = vmul.f32 %v2315_v29, %v678_v32  ;;  %v449_v47 = vadd.f32 %v2313_v26, %v448_v39  ;;  %v874_v39 = vld [vmem:[#allocation2 + $0x10] sm:$0xff] }
 0x3be   : > { %v2317_v36 = vpop.eup %2316  ;;  %v881_v44 = vunpack.c.h.bf16 %v874_v39 }
 0x3bf   : > { %v600_v37 = vmul.f32 %v2317_v36, %v2537_v28  ;;  %v680_v38 = vadd.f32 %v2315_v29, %v679_v34  ;;  %vm605_vm14 = vweird.f32 %v2317_v36  ;;  %v453_v53 = vsel %vm452_vm2, %v2313_v26, %v449_v47  ;;  %v872_v47 = vld [vmem:[#allocation2] sm:$0xff] }
 0x3c0   : > { %vm606_vm3 = vmor %vm604_vm1, %vm605_vm14  ;;  %v458_v56 = vsel %vm455_vm6, %v457_v55, %v453_v53  ;;  %v876_v48 = vunpack.c.l.bf16 %v872_v47 }
 0x3c1   : > { %v601_v41 = vsub.f32 1.0, %v600_v37  ;;  %v684_v42 = vsel %vm683_vm11, %v2315_v29, %v680_v38  ;;  %v875_v38 = vld [vmem:[#allocation2 + $0x18] sm:$0xff] }
 0x3c2   : > { %v689_v43 = vsel %vm686_vm12, %v688_v40, %v684_v42  ;;  %v873_v40 = vld [vmem:[#allocation2 + $0x8] sm:$0xff]  ;;  %v883_v42 = vunpack.c.h.bf16 %v875_v38 }
 0x3c3   : > { %692 = vperm.xlu2 %2267, %v689_v43   ;;  %v602_v45 = vmul.f32 %v2317_v36, %v601_v41  ;;  %v882_v41 = vunpack.c.l.bf16 %v875_v38  ;;  %v880_v43 = vunpack.c.l.bf16 %v874_v39  ;;  %v879_v46 = vunpack.c.h.bf16 %v873_v40 }
 0x3c4   : > { %919 = vmatpush.msrb.mxu1 %v883_v42 }
 0x3c5   : > { %v603_v49 = vadd.f32 %v2317_v36, %v602_v45  ;;  %899 = vmatpush.msra.mxu0 %v882_v41  ;;  %v878_v45 = vunpack.c.l.bf16 %v873_v40 }
 0x3c6   : > { %920 = vmatpush.msrb.mxu1 %v881_v44 }
 0x3c7   : > { %v607_v52 = vsel %vm606_vm3, %v2317_v36, %v603_v49  ;;  %900 = vmatpush.msra.mxu0 %v880_v43  ;;  %v877_v49 = vunpack.c.h.bf16 %v872_v47 }
 0x3c8   : > { %v612_v54 = vsel %vm609_vm5, %v611_v51, %v607_v52  ;;  %921 = vmatpush.msrb.mxu1 %v879_v46 }
 0x3c9   : > { %615 = vperm.xlu1 %2266, %v612_v54   ;;  %901 = vmatpush.msra.mxu0 %v878_v45 }
 0x3ca   : > { %922 = vmatpush.msrb.mxu1 %v877_v49 }
 0x3cb   : > { %461 = vperm.xlu2 %2267, %v458_v56   ;;  %902 = vmatpush.msra.mxu0 %v876_v48  ;;  %v258_v56 = vlaneseq }
 0x3cd   : > { %v2601_v57 = vshrl.u32 %v258_v56, 7 }
 0x3cf   : > { %vm260_vm10 = vcmp.lt.s32.totalorder %v2601_v57, 4 }
 0x3d3   : > { %2268 = vset.pattern.permute.xlu2 %v2402_v1 }
 0x41a   : > { %v539_v59 = vpop.permute.xlu0 %538 }
 0x41b   : > { %v541_v60 = vmul.f32 %v539_v59, %v2522_v13 }
 0x41d   : > { %722 = vrot.lane.b32.xlu1 %v541_v60, %s2407_s14  ;;  %v693_v61 = vpop.permute.xlu2 %692  ;;  %v938_v60 = vld [vmem:[%s2838_s4 + $0x8] sm:$0xff] }
 0x41e   : > { %v695_v3 = vmul.f32 %v693_v61, %v2533_v25 }
 0x425   : > { %774 = vrot.lane.b32.xlu1 %v695_v3, %s2406_s13  ;;  %v462_v4 = vpop.permute.xlu2 %461 }
 0x426   : > { %v464_v5 = vmul.f32 %v462_v4, %v2529_v24 }
 0x428   : > { %2182 = vmatmul.msk.f32.vlgmr.msrb.gmra.mxu2 %vm391_vm4, %v464_v5 }
 0x43b   : > { %v616_v6 = vpop.permute.xlu1 %615 }
 0x43c   : > { %v618_v7 = vmul.f32 %v616_v6, %v2537_v28 }
 0x43e   : > { %748 = vrot.lane.b32.xlu2 %v618_v7, %s2408_s15 }
 0x48f   : > { %v723_v13 = vpop.permute.xlu1 %722 }
 0x490   : > { %2183 = vmatmul.msk.f32.vlgmr.msrb.gmra.mxu3 %vm391_vm4, %v723_v13 }
 0x497   : > { %v775_v14 = vpop.permute.xlu1 %774 }
 0x498   : > { %2185 = vmatmul.msk.f32.vlgmr.msra.gmra.mxu1 %vm391_vm4, %v775_v14  ;;  %v749_v15 = vpop.permute.xlu2 %748 }
 0x499   : > { %2184 = vmatmul.msk.f32.vlgmr.msrb.gmra.mxu0 %vm391_vm4, %v749_v15  ;;  %v940_v15 = vld [vmem:[%s2506_s21 + $0x8] sm:$0xff] }
 0x4ab   : > { %v716_v17 = vpop.f32.mrf.mxu2 }
 0x4ac   : > { %v720_v18 = vadd.f32 %v2294_v16, %v716_v17 }
 0x513   : > { %v743_v19 = vpop.f32.mrf.mxu3 }
 0x514   : > { %v746_v20 = vadd.f32 %v743_v19, %v720_v18 }
 0x515   : > { %v795_v23 = vpop.f32.mrf.mxu1 }
 0x516   : > { %v769_v21 = vpop.f32.mrf.mxu0 }
 0x517   : > { %v772_v22 = vadd.f32 %v769_v21, %v746_v20 }
 0x519   : > { %v798_v24 = vadd.f32 %v795_v23, %v772_v22 }
 0x51b   : > { %v2587_v25 = vadd.f32 %v798_v24, %v2467_v2 }
 0x51d   : > { %2186 = vmatmul.msk.f32.vlgmr.msra.gmra.mxu2 %vm261_vm0, %v2587_v25  ;;  %v823_v26 = vmul.f32 %v2587_v25, %v2587_v25 }
 0x51f   : > { %2187 = vmatmul.msk.f32.vlgmr.msra.gmra.mxu3 %vm261_vm0, %v823_v26 }
 0x5a0   : > { %v820_v27 = vpop.f32.mrf.mxu2 }
 0x5a1   : > { %v853_v28 = vmul.f32 %v820_v27, %v820_v27  ;;  %849 = vperm.xlu2 %2268, %v820_v27  }
 0x5a2   : > { %v844_v29 = vpop.f32.mrf.mxu3 }
 0x5a3   : > { %v854_v30 = vsub.f32 %v844_v29, %v853_v28 }
 0x5a5   : > { %v855_v31 = vadd.f32 1e-05, %v854_v30 }
 0x5a7   : > { %2318 = vrsqrt.f32 %v855_v31  ;;  %vm862_vm8 = vweird.f32 %v855_v31 }
 0x5a9   : > { %2271 = vset.pattern.permute.xlu2 %v2411_v12 }
 0x5ad   : > { %v2319_v32 = vpop.eup %2318 }
 0x5ae   : > { %v857_v2 = vmul.f32 %v2319_v32, %v855_v31  ;;  %vm863_vm7 = vweird.f32 %v2319_v32 }
 0x5af   : > { %vm864_vm9 = vmor %vm862_vm8, %vm863_vm7 }
 0x5b0   : > { %v858_v33 = vmul.f32 %v2319_v32, %v857_v2 }
 0x5b2   : > { %v859_v34 = vmul.f32 0.5, %v858_v33 }
 0x5b4   : > { %v860_v35 = vsub.f32 1.5, %v859_v34 }
 0x5b6   : > { %v861_v36 = vmul.f32 %v2319_v32, %v860_v35 }
 0x5b8   : > { %v865_v37 = vsel %vm864_vm9, %v2319_v32, %v861_v36 }
 0x5b9   : > { %868 = vperm.xlu0 %2269, %v865_v37  }
 0x5c1   : > { %2270 = vset.pattern.permute.xlu0 %v2411_v12 }
 0x5fb   : > { %v850_v50 = vpop.permute.xlu2 %849 }
 0x5fc   : > { %v852_v51 = vsub.f32 %v2587_v25, %v850_v50 }
 0x62b   : > { %v869_v52 = vpop.permute.xlu0 %868 }
 0x62c   : > { %v871_v53 = vmul.f32 %v869_v52, %v852_v51 }
 0x62e   : > { %2188 = vmatmul.msk.f32.vlgmr.msra.gmra.mxu0 %vm261_vm0, %v871_v53  ;;  %2189 = vmatmul.msk.f32.vlgmr.msrb.gmra.mxu1 %vm261_vm0, %v871_v53 }
 0x6ab   : > { %v904_v54 = vpop.f32.mrf.mxu0  ;;  %v924_v55 = vpop.f32.mrf.mxu1 }
 0x6ac   : > { %933 = vrot.lane.b32.xlu2 %v924_v55, %s2412_s26  ;;  %931 = vrot.lane.b32.xlu1 %v904_v54, %s2412_s26 }
 0x706   : > { %v934_v59 = vpop.permute.xlu2 %933 }
 0x71e   : > { %v932_v61 = vpop.permute.xlu1 %931 }
 0x71f   : > { %v935_v62 = vsel %vm261_vm0, %v932_v61, %v934_v59 }
 0x720   : > { %v937_v3 = vsel %vm260_vm10, %v904_v54, %v935_v62 }
 0x721   : > { %v939_v4 = vadd.f32 %v938_v60, %v937_v3 }
 0x723   : > { %1099 = vrot.lane.b32.xlu0 %v939_v4, %s2408_s15  ;;  %1101 = vrot.lane.b32.xlu2 %v939_v4, %s2404_s11 }
 0x724   : > { %947 = vrot.lane.b32.xlu1 %v939_v4, %s2403_s8 }
 0x72b   : > { %1178 = vrot.lane.b32.xlu0 %v939_v4, %s2409_s16  ;;  %1022 = vrot.lane.b32.xlu2 %v939_v4, %s2407_s14 }
 0x72c   : > { %1024 = vrot.lane.b32.xlu1 %v939_v4, %s2405_s12 }
 0x734   : > { %1176 = vrot.lane.b32.xlu1 %v939_v4, %s2406_s13 }
 0x77d   : > { %v1102_v7 = vpop.permute.xlu2 %1101 }
 0x785   : > { %v1023_v13 = vpop.permute.xlu2 %1022 }
 0x795   : > { %v1100_v5 = vpop.permute.xlu0 %1099 }
 0x796   : > { %v948_v6 = vpop.permute.xlu1 %947 }
 0x797   : > { %2190 = vmatpush.xpose.msk.msrb.mxu2 %vm391_vm4, %v948_v6 }
 0x79a   : > { %2191 = vmatmul.msk.f32.vlgmr.msrb.gmra.mxu2 %vm391_vm4, %v939_v4 }
 0x79b   : > { %2196 = vmatpush.xpose.msk.msra.mxu2 %vm391_vm4, %v1102_v7 }
 0x79d   : > { %v1179_v8 = vpop.permute.xlu0 %1178 }
 0x79e   : > { %v1025_v10 = vpop.permute.xlu1 %1024 }
 0x79f   : > { %2193 = vmatpush.xpose.msk.msrb.mxu0 %vm391_vm4, %v1025_v10 }
 0x7a2   : > { %2194 = vmatmul.msk.f32.vlgmr.msrb.gmra.mxu0 %vm391_vm4, %v1023_v13  ;;  %2197 = vmatmul.msk.f32.vlgmr.msra.gmra.mxu2 %vm391_vm4, %v1100_v5 }
 0x7a3   : > { %2199 = vmatpush.xpose.msk.msra.mxu0 %vm391_vm4, %v1179_v8 }
 0x7a6   : > { %v1177_v14 = vpop.permute.xlu1 %1176 }
 0x7aa   : > { %2200 = vmatmul.msk.f32.vlgmr.msra.gmra.mxu0 %vm391_vm4, %v1177_v14 }
 0x81d   : > { %v970_v16 = vpop.f32.mrf.mxu2 }
 0x81e   : > { %v971_v17 = vadd.f32 %v970_v16, %v940_v15 }
 0x81f   : > { %v1047_v18 = vpop.f32.mrf.mxu0 }
 0x820   : > { %v1048_v19 = vadd.f32 %v1047_v18, %v940_v15  ;;  %v973_v20 = vsel %vm391_vm4, %v971_v17, -inf }
 0x821   : > { %974 = vmax.xlane.f32.xlu2 %v973_v20 }
 0x822   : > { %v1050_v21 = vsel %vm391_vm4, %v1048_v19, -inf }
 0x823   : > { %1051 = vmax.xlane.f32.xlu0 %v1050_v21 }
 0x825   : > { %v1124_v22 = vpop.f32.mrf.mxu2 }
 0x826   : > { %v1125_v23 = vadd.f32 %v1124_v22, %v940_v15 }
 0x827   : > { %v1201_v24 = vpop.f32.mrf.mxu0 }
 0x828   : > { %v1202_v26 = vadd.f32 %v1201_v24, %v940_v15  ;;  %v1127_v27 = vsel %vm391_vm4, %v1125_v23, -inf }
 0x829   : > { %1128 = vmax.xlane.f32.xlu1 %v1127_v27 }
 0x82a   : > { %v1204_v28 = vsel %vm391_vm4, %v1202_v26, -inf }
 0x82b   : > { %1205 = vmax.xlane.f32.xlu0 %v1204_v28 }
 0x839   : > { %943 = vrot.lane.b32.xlu2 %v939_v4, %s2410_s23 }
 0x894   : > { %v975_v29 = vpop.xlane.xlu2 %974 }
 0x895   : > { %v976_v30 = vsub.f32 %v971_v17, %v975_v29 }
 0x896   : > { %v1052_v31 = vpop.xlane.xlu0 %1051 }
 0x897   : > { %v977_v32 = vmul.f32 1.442695, %v976_v30  ;;  %v1053_v2 = vsub.f32 %v1048_v19, %v1052_v31 }
 0x899   : > { %2320 = vpow2.f32 %v977_v32  ;;  %v1054_v33 = vmul.f32 1.442695, %v1053_v2 }
 0x89b   : > { %2322 = vpow2.f32 %v1054_v33 }
 0x89c   : > { %v944_v34 = vpop.permute.xlu2 %943  ;;  %v1129_v35 = vpop.xlane.xlu1 %1128 }
 0x89d   : > { %v946_v36 = vsel %vm261_vm0, %v944_v34, 1.0  ;;  %v1130_v37 = vsub.f32 %v1125_v23, %v1129_v35 }
 0x89e   : > { %997 = vmatpush.msrb.mxu3 %v946_v36  ;;  %1074 = vmatpush.msra.mxu1 %v946_v36  ;;  %v1206_v38 = vpop.xlane.xlu0 %1205 }
 0x89f   : > { %v2321_v39 = vpop.eup %2320  ;;  %v1131_v40 = vmul.f32 1.442695, %v1130_v37  ;;  %v1207_v41 = vsub.f32 %v1202_v26, %v1206_v38  ;;  %v2277_v37 = vpack.i.bf16 %v2574_v9, %v2577_v11 }
 0x8a0   : > { %1151 = vmatpush.msra.mxu3 %v946_v36  ;;  %1228 = vmatpush.msrb.mxu1 %v946_v36  ;;  %v2272_v36 = vpack.i.bf16 %v2561_v63, %v2552_v58 }
 0x8a1   : > { %2192 = vmatmul.msk.f32.vlgmr.msrb.gmra.mxu3 %vm391_vm4, %v2321_v39  ;;  %v2323_v42 = vpop.eup %2322  ;;  %2324 = vpow2.f32 %v1131_v40  ;;  %v1208_v43 = vmul.f32 1.442695, %v1207_v41 }
 0x8a2   : > { %2195 = vmatmul.msk.f32.vlgmr.msra.gmra.mxu1 %vm391_vm4, %v2323_v42 }
 0x8a3   : > { %2326 = vpow2.f32 %v1208_v43 }
 0x8a7   : > { %v2325_v44 = vpop.eup %2324 }
 0x8a9   : > { %2198 = vmatmul.msk.f32.vlgmr.msra.gmra.mxu3 %vm391_vm4, %v2325_v44  ;;  %v2327_v45 = vpop.eup %2326 }
 0x8aa   : > { %2201 = vmatmul.msk.f32.vlgmr.msrb.gmra.mxu1 %vm391_vm4, %v2327_v45 }
 0x91f   : > { %v2636_v46 = vpop.f32.mrf.mxu1 }
 0x920   : > { %2328 = vrcp.f32 %v2636_v46  ;;  %v1090_v53 = vand.u32 2147483648, %v2636_v46  ;;  %v1088_v59 = vand.u32 2147483647, %v2636_v46  ;;  %vm1084_vm12 = vweird.f32 %v2636_v46 }
 0x922   : > { %v1091_v3 = vor.u32 1.1754944e-38, %v1090_v53  ;;  %vm1089_vm14 = vcmp.eq.f32.partialorder %v1088_v59, 8.507059e+37 }
 0x924   : > { %v2639_v47 = vpop.f32.mrf.mxu3 }
 0x925   : > { %2330 = vrcp.f32 %v2639_v47  ;;  %v1011_v8 = vand.u32 2147483647, %v2639_v47  ;;  %v1013_v15 = vand.u32 2147483648, %v2639_v47  ;;  %vm1007_vm1 = vweird.f32 %v2639_v47 }
 0x926   : > { %v2329_v48 = vpop.eup %2328 }
 0x927   : > { %v1080_v49 = vmul.f32 %v2329_v48, %v2636_v46  ;;  %v2643_v50 = vpop.f32.mrf.mxu1  ;;  %vm1085_vm11 = vweird.f32 %v2329_v48  ;;  %vm1012_vm5 = vcmp.eq.f32.partialorder %v1011_v8, 8.507059e+37  ;;  %v1014_v24 = vor.u32 1.1754944e-38, %v1013_v15 }
 0x928   : > { %2332 = vrcp.f32 %v2643_v50  ;;  %vm1086_vm13 = vmor %vm1084_vm12, %vm1085_vm11  ;;  %v1242_v16 = vand.u32 2147483647, %v2643_v50  ;;  %v1244_v17 = vand.u32 2147483648, %v2643_v50  ;;  %vm1238_vm6 = vweird.f32 %v2643_v50 }
 0x929   : > { %v1081_v51 = vsub.f32 1.0, %v1080_v49 }
 0x92a   : > { %vm1243_vm8 = vcmp.eq.f32.partialorder %v1242_v16, 8.507059e+37  ;;  %v1245_v26 = vor.u32 1.1754944e-38, %v1244_v17 }
 0x92b   : > { %v2331_v52 = vpop.eup %2330  ;;  %v1082_v56 = vmul.f32 %v2329_v48, %v1081_v51 }
 0x92c   : > { %v1003_v54 = vmul.f32 %v2331_v52, %v2639_v47  ;;  %v2648_v55 = vpop.f32.mrf.mxu3  ;;  %vm1008_vm15 = vweird.f32 %v2331_v52 }
 0x92d   : > { %2334 = vrcp.f32 %v2648_v55  ;;  %v1083_v61 = vadd.f32 %v2329_v48, %v1082_v56  ;;  %vm2660_vm3 = vmor %vm1007_vm1, %vm1008_vm15  ;;  %v1167_v27 = vand.u32 2147483648, %v2648_v55  ;;  %v1165_v30 = vand.u32 2147483647, %v2648_v55 }
 0x92e   : > { %v1004_v60 = vsub.f32 1.0, %v1003_v54  ;;  %v2333_v62 = vpop.eup %2332  ;;  %vm1161_vm11 = vweird.f32 %v2648_v55 }
 0x92f   : > { %v1234_v4 = vmul.f32 %v2333_v62, %v2643_v50  ;;  %v1087_v5 = vsel %vm1086_vm13, %v2329_v48, %v1083_v61  ;;  %vm1239_vm2 = vweird.f32 %v2333_v62  ;;  %v1168_v33 = vor.u32 1.1754944e-38, %v1167_v27 }
 0x930   : > { %v1005_v6 = vmul.f32 %v2331_v52, %v1004_v60  ;;  %v1092_v7 = vsel %vm1089_vm14, %v1091_v3, %v1087_v5  ;;  %vm1240_vm7 = vmor %vm1238_vm6, %vm1239_vm2  ;;  %vm1166_vm13 = vcmp.eq.f32.partialorder %v1165_v30, 8.507059e+37 }
 0x931   : > { %v1235_v10 = vsub.f32 1.0, %v1234_v4  ;;  %1095 = vperm.xlu1 %2266, %v1092_v7  }
 0x932   : > { %v1006_v13 = vadd.f32 %v2331_v52, %v1005_v6 }
 0x933   : > { %v2335_v14 = vpop.eup %2334  ;;  %v1236_v19 = vmul.f32 %v2333_v62, %v1235_v10 }
 0x934   : > { %v1157_v18 = vmul.f32 %v2335_v14, %v2648_v55  ;;  %v1010_v22 = vsel %vm2660_vm3, %v2331_v52, %v1006_v13  ;;  %vm1162_vm9 = vweird.f32 %v2335_v14  ;;  %v1453_v13 = vld [vmem:[#allocation2 + $0x58] sm:$0xf] }
 0x935   : > { %v1237_v23 = vadd.f32 %v2333_v62, %v1236_v19  ;;  %v1015_v31 = vsel %vm1012_vm5, %v1014_v24, %v1010_v22  ;;  %vm1163_vm12 = vmor %vm1161_vm11, %vm1162_vm9  ;;  %v1457_v15 = vunpack.c.l.bf16 %v1453_v13 }
 0x936   : > { %v1158_v21 = vsub.f32 1.0, %v1157_v18 }
 0x937   : > { %v1241_v28 = vsel %vm1240_vm7, %v2333_v62, %v1237_v23 }
 0x938   : > { %v1159_v29 = vmul.f32 %v2335_v14, %v1158_v21  ;;  %v1246_v32 = vsel %vm1243_vm8, %v1245_v26, %v1241_v28 }
 0x939   : > { %1018 = vperm.xlu1 %2266, %v1015_v31   ;;  %1249 = vperm.xlu2 %2271, %v1246_v32   ;;  %v1450_v31 = vld [vmem:[#allocation2 + $0x40] sm:$0xf] }
 0x93a   : > { %v1160_v2 = vadd.f32 %v2335_v14, %v1159_v29  ;;  %v1451_v29 = vld [vmem:[#allocation2 + $0x48] sm:$0xf]  ;;  %v1454_v32 = vunpack.c.l.bf16 %v1450_v31 }
 0x93b   : > { %v1455_v30 = vunpack.c.l.bf16 %v1451_v29 }
 0x93c   : > { %v1164_v34 = vsel %vm1163_vm12, %v2335_v14, %v1160_v2  ;;  %v1452_v14 = vld [vmem:[#allocation2 + $0x50] sm:$0xf] }
 0x93d   : > { %v1169_v35 = vsel %vm1166_vm13, %v1168_v33, %v1164_v34  ;;  %v1456_v16 = vunpack.c.l.bf16 %v1452_v14 }
 0x93e   : > { %1172 = vperm.xlu0 %2270, %v1169_v35  }
 0x941   : > { %2273 = vrot.lane.b32.xlu2 %v2272_v36, %s2403_s8  ;;  %2282 = vset.pattern.permute.xlu1 %v2402_v1  ;;  %v2296_v36 = vld [vmem:[%s2837_s3 + $0x2] ss:$0 sm:$0xff] }
 0x942   : > { %2283 = vset.pattern.permute.xlu2 %v2402_v1 }
 0x949   : > { %2278 = vrot.lane.b32.xlu2 %v2277_v37, %s2403_s8 }
 0x993   : > { %v1250_v38 = vpop.permute.xlu2 %1249 }
 0x994   : > { %v1252_v39 = vmul.f32 %v1250_v38, %v2643_v50 }
 0x996   : > { %1343 = vrot.lane.b32.xlu2 %v1252_v39, %s2406_s13 }
 0x99b   : > { %v2274_v40 = vpop.permute.xlu2 %2273 }
 0x99c   : > { %v2276_v41 = vunpack.i.h.bf16 %v2274_v40  ;;  %v2275_v42 = vunpack.i.l.bf16 %v2274_v40 }
 0x99e   : > { %1275 = vmatpush.msrb.mxu2 %v2275_v42  ;;  %1306 = vmatpush.msrb.mxu3 %v2276_v41 }
 0x9a0   : > { %1393 = vmatpush.msra.mxu2 %v2401_v0  ;;  %1417 = vmatpush.msra.mxu3 %v2401_v0 }
 0x9a2   : > { %1394 = vmatpush.msra.mxu2 %v2401_v0  ;;  %1418 = vmatpush.msra.mxu3 %v2401_v0 }
 0x9a3   : > { %v1096_v43 = vpop.permute.xlu1 %1095  ;;  %v2279_v44 = vpop.permute.xlu2 %2278 }
 0x9a4   : > { %1395 = vmatpush.msra.mxu2 %v2401_v0  ;;  %1419 = vmatpush.msra.mxu3 %v2401_v0  ;;  %v1098_v45 = vmul.f32 %v1096_v43, %v2636_v46  ;;  %v2281_v48 = vunpack.i.h.bf16 %v2279_v44  ;;  %v2280_v49 = vunpack.i.l.bf16 %v2279_v44 }
 0x9a6   : > { %1396 = vmatpush.msra.mxu2 %v2401_v0  ;;  %1420 = vmatpush.msra.mxu3 %v2401_v0 }
 0x9a7   : > { %1283 = vrot.lane.b32.xlu1 %v1098_v45, %s2407_s14  ;;  %1366 = vmatpush.msra.mxu1 %v2281_v48 }
 0x9a8   : > { %1336 = vmatpush.msrb.mxu0 %v2280_v49  ;;  %v1483_v49 = vld [vmem:[%s2506_s21 + $0x10] sm:$0xff] }
 0x9aa   : > { %1475 = vmatpush.msra.mxu0 %v1457_v15 }
 0x9ab   : > { %v1019_v50 = vpop.permute.xlu1 %1018 }
 0x9ac   : > { %v1021_v51 = vmul.f32 %v1019_v50, %v2639_v47  ;;  %v2295_v47 = vld [vmem:[%s2837_s3 + $0x4] ss:$0 sm:$0xff]  ;;  %1476 = vmatpush.msra.mxu0 %v1456_v16 }
 0x9ae   : > { %2202 = vmatmul.msk.f32.vlgmr.msrb.gmra.mxu2 %vm391_vm4, %v1021_v51  ;;  %1477 = vmatpush.msra.mxu0 %v1455_v30 }
 0x9b0   : > { %v1173_v52 = vpop.permute.xlu0 %1172  ;;  %1478 = vmatpush.msra.mxu0 %v1454_v32 }
 0x9b1   : > { %v1175_v53 = vmul.f32 %v1173_v52, %v2648_v55 }
 0x9b3   : > { %1313 = vrot.lane.b32.xlu1 %v1175_v53, %s2408_s15 }
 0x9f0   : > { %v1344_v46 = vpop.permute.xlu2 %1343 }
 0x9f1   : > { %2205 = vmatmul.msk.f32.vlgmr.msra.gmra.mxu1 %vm391_vm4, %v1344_v46 }
 0xa19   : > { %v1284_v54 = vpop.permute.xlu1 %1283 }
 0xa1a   : > { %2203 = vmatmul.msk.f32.vlgmr.msrb.gmra.mxu3 %vm391_vm4, %v1284_v54 }
 0xa25   : > { %v1314_v56 = vpop.permute.xlu1 %1313 }
 0xa26   : > { %2204 = vmatmul.msk.f32.vlgmr.msrb.gmra.mxu0 %vm391_vm4, %v1314_v56 }
 0xa31   : > { %v1277_v59 = vpop.f32.mrf.mxu2 }
 0xa32   : > { %v1281_v61 = vadd.f32 %v2295_v47, %v1277_v59 }
 0xa6e   : > { %v1368_v4 = vpop.f32.mrf.mxu1 }
 0xa9d   : > { %v1308_v60 = vpop.f32.mrf.mxu3 }
 0xa9e   : > { %v1311_v62 = vadd.f32 %v1308_v60, %v1281_v61 }
 0xaa3   : > { %v1338_v55 = vpop.f32.mrf.mxu0 }
 0xaa4   : > { %v1341_v3 = vadd.f32 %v1338_v55, %v1311_v62 }
 0xaa6   : > { %v1371_v5 = vadd.f32 %v1368_v4, %v1341_v3 }
 0xaa8   : > { %1373 = vrot.lane.b32.xlu0 %v1371_v5, %s2403_s8 }
 0xb1a   : > { %v1374_v6 = vpop.permute.xlu0 %1373 }
 0xb1b   : > { %v1376_v7 = vsel %vm260_vm10, %v1371_v5, %v1374_v6 }
 0xb1c   : > { %v2704_v8 = vadd.f32 %v1376_v7, %v2587_v25 }
 0xb1e   : > { %v1401_v10 = vmul.f32 %v2704_v8, %v2704_v8  ;;  %2206 = vmatmul.msk.f32.vlgmr.msra.gmra.mxu2 %vm261_vm0, %v2704_v8 }
 0xb20   : > { %2207 = vmatmul.msk.f32.vlgmr.msra.gmra.mxu3 %vm261_vm0, %v1401_v10 }
 0xba1   : > { %v1398_v17 = vpop.f32.mrf.mxu2 }
 0xba2   : > { %v1431_v18 = vmul.f32 %v1398_v17, %v1398_v17  ;;  %1427 = vperm.xlu1 %2282, %v1398_v17  }
 0xba3   : > { %v1422_v19 = vpop.f32.mrf.mxu3 }
 0xba4   : > { %v1432_v25 = vsub.f32 %v1422_v19, %v1431_v18 }
 0xba6   : > { %v1433_v20 = vadd.f32 1e-05, %v1432_v25 }
 0xba8   : > { %2336 = vrsqrt.f32 %v1433_v20  ;;  %vm1440_vm15 = vweird.f32 %v1433_v20 }
 0xbaa   : > { %2285 = vset.pattern.permute.xlu1 %v2411_v12 }
 0xbae   : > { %v2337_v21 = vpop.eup %2336 }
 0xbaf   : > { %v1435_v22 = vmul.f32 %v2337_v21, %v1433_v20  ;;  %vm1441_vm14 = vweird.f32 %v2337_v21 }
 0xbb0   : > { %vm1442_vm1 = vmor %vm1440_vm15, %vm1441_vm14 }
 0xbb1   : > { %v1436_v23 = vmul.f32 %v2337_v21, %v1435_v22 }
 0xbb3   : > { %v1437_v24 = vmul.f32 0.5, %v1436_v23 }
 0xbb5   : > { %v1438_v26 = vsub.f32 1.5, %v1437_v24 }
 0xbb7   : > { %v1439_v27 = vmul.f32 %v2337_v21, %v1438_v26 }
 0xbb9   : > { %v1443_v28 = vsel %vm1442_vm1, %v2337_v21, %v1439_v27 }
 0xbba   : > { %1446 = vperm.xlu2 %2283, %v1443_v28  }
 0xbc2   : > { %2284 = vset.pattern.permute.xlu2 %v2411_v12 }
 0xc14   : > { %v1428_v2 = vpop.permute.xlu1 %1427  ;;  %v1447_v34 = vpop.permute.xlu2 %1446 }
 0xc15   : > { %v1430_v33 = vsub.f32 %v2704_v8, %v1428_v2 }
 0xc17   : > { %v1449_v35 = vmul.f32 %v1447_v34, %v1430_v33 }
 0xc19   : > { %2208 = vmatmul.msk.f32.vlgmr.msra.gmra.mxu0 %vm261_vm0, %v1449_v35 }
 0xc96   : > { %v1480_v37 = vpop.f32.mrf.mxu0 }
 0xc97   : > { %v1481_v38 = vadd.f32 %v2296_v36, %v1480_v37 }
 0xc99   : > { %1644 = vrot.lane.b32.xlu2 %v1481_v38, %s2404_s11  ;;  %1567 = vrot.lane.b32.xlu1 %v1481_v38, %s2405_s12 }
 0xc9a   : > { %1490 = vrot.lane.b32.xlu0 %v1481_v38, %s2403_s8 }
 0xca1   : > { %1721 = vrot.lane.b32.xlu2 %v1481_v38, %s2409_s16  ;;  %1642 = vrot.lane.b32.xlu1 %v1481_v38, %s2408_s15 }
 0xca2   : > { %1565 = vrot.lane.b32.xlu0 %v1481_v38, %s2407_s14 }
 0xcaa   : > { %1719 = vrot.lane.b32.xlu0 %v1481_v38, %s2406_s13 }
 0xcb2   : > { %1486 = vrot.lane.b32.xlu0 %v1481_v38, %s2410_s23 }
 0xcf3   : > { %v1645_v12 = vpop.permute.xlu2 %1644 }
 0xcfb   : > { %v1722_v40 = vpop.permute.xlu2 %1721 }
 0xd0b   : > { %v1568_v39 = vpop.permute.xlu1 %1567 }
 0xd0c   : > { %v1491_v41 = vpop.permute.xlu0 %1490  ;;  %2212 = vmatpush.xpose.msk.msrb.mxu3 %vm391_vm4, %v1568_v39 }
 0xd0d   : > { %2209 = vmatpush.xpose.msk.msrb.mxu1 %vm391_vm4, %v1491_v41 }
 0xd10   : > { %2218 = vmatpush.xpose.msk.msra.mxu3 %vm391_vm4, %v1722_v40  ;;  %2210 = vmatmul.msk.f32.vlgmr.msrb.gmra.mxu1 %vm391_vm4, %v1481_v38 }
 0xd11   : > { %2215 = vmatpush.xpose.msk.msra.mxu1 %vm391_vm4, %v1645_v12 }
 0xd13   : > { %v1643_v43 = vpop.permute.xlu1 %1642 }
 0xd14   : > { %v1566_v42 = vpop.permute.xlu0 %1565 }
 0xd15   : > { %2213 = vmatmul.msk.f32.vlgmr.msrb.gmra.mxu3 %vm391_vm4, %v1566_v42 }
 0xd18   : > { %2216 = vmatmul.msk.f32.vlgmr.msra.gmra.mxu1 %vm391_vm4, %v1643_v43 }
 0xd1c   : > { %v1720_v44 = vpop.permute.xlu0 %1719 }
 0xd1d   : > { %2219 = vmatmul.msk.f32.vlgmr.msra.gmra.mxu3 %vm391_vm4, %v1720_v44 }
 0xd24   : > { %v1487_v45 = vpop.permute.xlu0 %1486 }
 0xd25   : > { %v1489_v48 = vsel %vm261_vm0, %v1487_v45, 1.0 }
 0xd26   : > { %1540 = vmatpush.msrb.mxu2 %v1489_v48  ;;  %1617 = vmatpush.msrb.mxu0 %v1489_v48 }
 0xd28   : > { %1694 = vmatpush.msra.mxu2 %v1489_v48  ;;  %1771 = vmatpush.msra.mxu0 %v1489_v48 }
 0xd8d   : > { %v1513_v50 = vpop.f32.mrf.mxu1 }
 0xd8e   : > { %v1514_v51 = vadd.f32 %v1513_v50, %v1483_v49 }
 0xd90   : > { %v1516_v52 = vsel %vm391_vm4, %v1514_v51, -inf }
 0xd91   : > { %1517 = vmax.xlane.f32.xlu1 %v1516_v52 }
 0xd95   : > { %v1667_v53 = vpop.f32.mrf.mxu1 }
 0xd96   : > { %v1668_v46 = vadd.f32 %v1667_v53, %v1483_v49 }
 0xd98   : > { %v1590_v54 = vpop.f32.mrf.mxu3  ;;  %v1670_v56 = vsel %vm391_vm4, %v1668_v46, -inf }
 0xd99   : > { %v1591_v47 = vadd.f32 %v1590_v54, %v1483_v49  ;;  %1671 = vmax.xlane.f32.xlu2 %v1670_v56 }
 0xd9b   : > { %v1593_v59 = vsel %vm391_vm4, %v1591_v47, -inf }
 0xd9c   : > { %1594 = vmax.xlane.f32.xlu0 %v1593_v59 }
 0xda0   : > { %v1744_v60 = vpop.f32.mrf.mxu3 }
 0xda1   : > { %v1745_v61 = vadd.f32 %v1744_v60, %v1483_v49 }
 0xda3   : > { %v1747_v62 = vsel %vm391_vm4, %v1745_v61, -inf }
 0xda4   : > { %1748 = vmax.xlane.f32.xlu1 %v1747_v62 }
 0xe04   : > { %v1518_v55 = vpop.xlane.xlu1 %1517 }
 0xe05   : > { %v1519_v3 = vsub.f32 %v1514_v51, %v1518_v55 }
 0xe07   : > { %v1520_v4 = vmul.f32 1.442695, %v1519_v3 }
 0xe09   : > { %2338 = vpow2.f32 %v1520_v4 }
 0xe0c   : > { %v1672_v5 = vpop.xlane.xlu2 %1671 }
 0xe0d   : > { %v1673_v6 = vsub.f32 %v1668_v46, %v1672_v5 }
 0xe0f   : > { %v2339_v7 = vpop.eup %2338  ;;  %v1674_v10 = vmul.f32 1.442695, %v1673_v6  ;;  %v1595_v13 = vpop.xlane.xlu0 %1594  ;;  %v2286_v6 = vpack.i.bf16 %v2577_v11, %v2561_v63 }
 0xe10   : > { %v1596_v14 = vsub.f32 %v1591_v47, %v1595_v13  ;;  %2211 = vmatmul.msk.f32.vlgmr.msrb.gmra.mxu2 %vm391_vm4, %v2339_v7 }
 0xe11   : > { %2340 = vpow2.f32 %v1674_v10 }
 0xe12   : > { %v1597_v15 = vmul.f32 1.442695, %v1596_v14 }
 0xe14   : > { %2342 = vpow2.f32 %v1597_v15 }
 0xe17   : > { %v2341_v16 = vpop.eup %2340  ;;  %v1749_v17 = vpop.xlane.xlu1 %1748 }
 0xe18   : > { %v1750_v18 = vsub.f32 %v1745_v61, %v1749_v17  ;;  %2217 = vmatmul.msk.f32.vlgmr.msra.gmra.mxu2 %vm391_vm4, %v2341_v16 }
 0xe1a   : > { %v2343_v19 = vpop.eup %2342  ;;  %v1751_v25 = vmul.f32 1.442695, %v1750_v18 }
 0xe1b   : > { %2214 = vmatmul.msk.f32.vlgmr.msrb.gmra.mxu0 %vm391_vm4, %v2343_v19 }
 0xe1c   : > { %2344 = vpow2.f32 %v1751_v25 }
 0xe22   : > { %v2345_v20 = vpop.eup %2344 }
 0xe23   : > { %2220 = vmatmul.msk.f32.vlgmr.msra.gmra.mxu0 %vm391_vm4, %v2345_v20 }
 0xe93   : > { %v2744_v21 = vpop.f32.mrf.mxu2 }
 0xe94   : > { %v1556_v62 = vand.u32 2147483648, %v2744_v21  ;;  %v1554_v55 = vand.u32 2147483647, %v2744_v21 }
 0xe96   : > { %v1557_v4 = vor.u32 1.1754944e-38, %v1556_v62  ;;  %v2029_v62 = vld [vmem:[#allocation2 + $0xf0] sm:$0xf] }
 0xe98   : > { %v2746_v22 = vpop.f32.mrf.mxu0 }
 0xe99   : > { %2346 = vrcp.f32 %v2746_v22  ;;  %v1633_v32 = vand.u32 2147483648, %v2746_v22  ;;  %v1631_v33 = vand.u32 2147483647, %v2746_v22  ;;  %vm1627_vm3 = vweird.f32 %v2746_v22 }
 0xe9b   : > { %v2749_v23 = vpop.f32.mrf.mxu2  ;;  %v1634_v12 = vor.u32 1.1754944e-38, %v1633_v32  ;;  %vm1632_vm7 = vcmp.eq.f32.partialorder %v1631_v33, 8.507059e+37 }
 0xe9c   : > { %2348 = vrcp.f32 %v2749_v23  ;;  %v1710_v37 = vand.u32 2147483648, %v2749_v23  ;;  %v1708_v40 = vand.u32 2147483647, %v2749_v23  ;;  %vm1704_vm8 = vweird.f32 %v2749_v23 }
 0xe9d   : > { %2350 = vrcp.f32 %v2744_v21 }
 0xe9e   : > { %v1711_v49 = vor.u32 1.1754944e-38, %v1710_v37  ;;  %vm1709_vm11 = vcmp.eq.f32.partialorder %v1708_v40, 8.507059e+37 }
 0xe9f   : > { %v2347_v24 = vpop.eup %2346 }
 0xea0   : > { %v1623_v26 = vmul.f32 %v2347_v24, %v2746_v22  ;;  %v2754_v27 = vpop.f32.mrf.mxu0  ;;  %vm1628_vm2 = vweird.f32 %v2347_v24 }
 0xea1   : > { %2352 = vrcp.f32 %v2754_v27  ;;  %vm1629_vm5 = vmor %vm1627_vm3, %vm1628_vm2  ;;  %v1787_v51 = vand.u32 2147483648, %v2754_v27  ;;  %v1785_v46 = vand.u32 2147483647, %v2754_v27  ;;  %vm1781_vm13 = vweird.f32 %v2754_v27 }
 0xea2   : > { %v2349_v28 = vpop.eup %2348  ;;  %v1624_v29 = vsub.f32 1.0, %v1623_v26  ;;  %vm1550_vm2 = vweird.f32 %v2744_v21 }
 0xea3   : > { %v2351_v30 = vpop.eup %2350  ;;  %v1700_v31 = vmul.f32 %v2349_v28, %v2749_v23  ;;  %vm1705_vm6 = vweird.f32 %v2349_v28  ;;  %v1788_v47 = vor.u32 1.1754944e-38, %v1787_v51  ;;  %vm1786_vm15 = vcmp.eq.f32.partialorder %v1785_v46, 8.507059e+37  ;;  %v2032_v46 = vld [vmem:[#allocation2 + $0x108] sm:$0xf] }
 0xea4   : > { %v1625_v2 = vmul.f32 %v2347_v24, %v1624_v29  ;;  %v1546_v35 = vmul.f32 %v2351_v30, %v2744_v21  ;;  %vm1706_vm9 = vmor %vm1704_vm8, %vm1705_vm6  ;;  %vm1551_vm1 = vweird.f32 %v2351_v30 }
 0xea5   : > { %v1701_v34 = vsub.f32 1.0, %v1700_v31  ;;  %vm1552_vm3 = vmor %vm1550_vm2, %vm1551_vm1 }
 0xea6   : > { %v1626_v36 = vadd.f32 %v2347_v24, %v1625_v2  ;;  %v1547_v45 = vsub.f32 1.0, %v1546_v35 }
 0xea7   : > { %v2353_v38 = vpop.eup %2352  ;;  %v1702_v39 = vmul.f32 %v2349_v28, %v1701_v34 }
 0xea8   : > { %v1777_v41 = vmul.f32 %v2353_v38, %v2754_v27  ;;  %v1630_v42 = vsel %vm1629_vm5, %v2347_v24, %v1626_v36  ;;  %vm1782_vm12 = vweird.f32 %v2353_v38  ;;  %v1548_v56 = vmul.f32 %v2351_v30, %v1547_v45 }
 0xea9   : > { %v1635_v43 = vsel %vm1632_vm7, %v1634_v12, %v1630_v42  ;;  %v1703_v44 = vadd.f32 %v2349_v28, %v1702_v39  ;;  %vm1783_vm14 = vmor %vm1781_vm13, %vm1782_vm12  ;;  %vm1555_vm5 = vcmp.eq.f32.partialorder %v1554_v55, 8.507059e+37  ;;  %v1988_v42 = vld [vmem:[#allocation2 + $0x98] sm:$0xf] }
 0xeaa   : > { %v1778_v48 = vsub.f32 1.0, %v1777_v41  ;;  %1638 = vperm.xlu2 %2284, %v1635_v43   ;;  %v1549_v61 = vadd.f32 %v2351_v30, %v1548_v56  ;;  %v1987_v43 = vld [vmem:[#allocation2 + $0x90] sm:$0xf]  ;;  %v1992_v45 = vunpack.c.l.bf16 %v1988_v42 }
 0xeab   : > { %v1707_v50 = vsel %vm1706_vm9, %v2349_v28, %v1703_v44  ;;  %v1986_v44 = vld [vmem:[#allocation2 + $0x88] sm:$0xf] }
 0xeac   : > { %v1712_v52 = vsel %vm1709_vm11, %v1711_v49, %v1707_v50  ;;  %v1779_v53 = vmul.f32 %v2353_v38, %v1778_v48  ;;  %v1553_v3 = vsel %vm1552_vm3, %v2351_v30, %v1549_v61  ;;  %v1991_v48 = vunpack.c.l.bf16 %v1987_v43  ;;  %v1985_v50 = vld [vmem:[#allocation2 + $0x80] sm:$0xf] }
 0xead   : > { %1715 = vperm.xlu1 %2285, %v1712_v52   ;;  %v1558_v5 = vsel %vm1555_vm5, %v1557_v4, %v1553_v3  ;;  %v1990_v49 = vunpack.c.l.bf16 %v1986_v44  ;;  %v1989_v51 = vunpack.c.l.bf16 %v1985_v50  ;;  %v2034_v52 = vld [vmem:[#allocation2 + $0x118] sm:$0xf]  ;;  %v2028_v3 = vld [vmem:[#allocation2 + $0xe8] sm:$0xf]  ;;  %v2045_v4 = vunpack.c.l.bf16 %v2029_v62 }
 0xeae   : > { %v1780_v54 = vadd.f32 %v2353_v38, %v1779_v53  ;;  %v2033_v53 = vld [vmem:[#allocation2 + $0x110] sm:$0xf] }
 0xeaf   : > { %v2049_v56 = vunpack.c.l.bf16 %v2033_v53 }
 0xeb0   : > { %v1784_v59 = vsel %vm1783_vm14, %v2353_v38, %v1780_v54  ;;  %v2050_v54 = vunpack.c.l.bf16 %v2034_v52 }
 0xeb1   : > { %v1789_v60 = vsel %vm1786_vm15, %v1788_v47, %v1784_v59  ;;  %v2031_v47 = vld [vmem:[#allocation2 + $0x100] sm:$0xf]  ;;  %v2048_v59 = vunpack.c.l.bf16 %v2032_v46 }
 0xeb2   : > { %1792 = vperm.xlu0 %2270, %v1789_v60   ;;  %2287 = vrot.lane.b32.xlu2 %v2286_v6, %s2412_s26  ;;  %v2030_v60 = vld [vmem:[#allocation2 + $0xf8] sm:$0xf]  ;;  %v2047_v61 = vunpack.c.l.bf16 %v2031_v47  ;;  %v2044_v6 = vunpack.c.l.bf16 %v2028_v3 }
 0xeb3   : > { %v2046_v55 = vunpack.c.l.bf16 %v2030_v60 }
 0xeb5   : > { %2291 = vset.pattern.permute.xlu1 %v2402_v1 }
 0xeba   : > { %1561 = vperm.xlu0 %2270, %v1558_v5   ;;  %v2027_v5 = vld [vmem:[#allocation2 + $0xe0] sm:$0xf] }
 0xec2   : > { %1885 = vrot.lane.b32.xlu0 %v2574_v9, %s2412_s26 }
 0xec3   : > { %2292 = vset.pattern.permute.xlu0 %v2402_v1 }
 0xf04   : > { %v1639_v7 = vpop.permute.xlu2 %1638 }
 0xf05   : > { %v1641_v10 = vmul.f32 %v1639_v7, %v2746_v22  ;;  %v2297_v22 = vld [vmem:[%s2837_s3 + $0x3] ss:$0 sm:$0xff]  ;;  %v2026_v7 = vld [vmem:[#allocation2 + $0xd8] sm:$0xf] }
 0xf07   : > { %1825 = vrot.lane.b32.xlu1 %v1641_v10, %s2407_s14  ;;  %v2043_v10 = vunpack.c.l.bf16 %v2027_v5 }
 0xf0c   : > { %v2288_v63 = vpop.permute.xlu2 %2287 }
 0xf0d   : > { %v2290_v11 = vunpack.i.h.bf16 %v2288_v63  ;;  %v2289_v15 = vunpack.i.l.bf16 %v2288_v63  ;;  %v2023_v63 = vld [vmem:[#allocation2 + $0xc0] sm:$0xf] }
 0xf0f   : > { %1796 = vrot.lane.b32.xlu1 %v2552_v58, %s2412_s26  ;;  %1847 = vmatpush.msrb.mxu2 %v2289_v15  ;;  %v2022_v15 = vld [vmem:[#allocation2 + $0xb8] sm:$0xf] }
 0xf10   : > { %1876 = vmatpush.msrb.mxu3 %v2290_v11 }
 0xf11   : > { %1952 = vmatpush.msra.mxu2 %v2401_v0 }
 0xf12   : > { %2010 = vmatpush.msra.mxu3 %v1992_v45 }
 0xf13   : > { %1953 = vmatpush.msra.mxu2 %v2401_v0 }
 0xf14   : > { %2011 = vmatpush.msra.mxu3 %v1991_v48 }
 0xf15   : > { %1954 = vmatpush.msra.mxu2 %v2401_v0 }
 0xf16   : > { %2012 = vmatpush.msra.mxu3 %v1990_v49 }
 0xf17   : > { %1955 = vmatpush.msra.mxu2 %v2401_v0 }
 0xf18   : > { %2013 = vmatpush.msra.mxu3 %v1989_v51 }
 0xf1f   : > { %v1716_v13 = vpop.permute.xlu1 %1715 }
 0xf20   : > { %v1718_v14 = vmul.f32 %v1716_v13, %v2749_v23  ;;  %v2025_v13 = vld [vmem:[#allocation2 + $0xd0] sm:$0xf] }
 0xf22   : > { %1854 = vrot.lane.b32.xlu2 %v1718_v14, %s2408_s15  ;;  %v2042_v14 = vunpack.c.l.bf16 %v2026_v7 }
 0xf24   : > { %v1793_v9 = vpop.permute.xlu0 %1792 }
 0xf25   : > { %v1795_v1 = vmul.f32 %v1793_v9, %v2754_v27  ;;  %v2024_v9 = vld [vmem:[#allocation2 + $0xc8] sm:$0xf] }
 0xf26   : > { %v2040_v11 = vunpack.c.l.bf16 %v2024_v9 }
 0xf2a   : > { %1883 = vrot.lane.b32.xlu2 %v1795_v1, %s2406_s13  ;;  %v2041_v1 = vunpack.c.l.bf16 %v2025_v13 }
 0xf2c   : > { %v1562_v58 = vpop.permute.xlu0 %1561 }
 0xf2d   : > { %v1564_v19 = vmul.f32 %v1562_v58, %v2744_v21  ;;  %v2039_v58 = vunpack.c.l.bf16 %v2023_v63 }
 0xf34   : > { %v1886_v16 = vpop.permute.xlu0 %1885 }
 0xf35   : > { %1905 = vmatpush.msrb.mxu0 %v1886_v16  ;;  %v2038_v16 = vunpack.c.l.bf16 %v2022_v15 }
 0xf37   : > { %2053 = vmatpush.msra.mxu0 %v2050_v54 }
 0xf39   : > { %2054 = vmatpush.msra.mxu0 %v2049_v56 }
 0xf3b   : > { %2055 = vmatpush.msra.mxu0 %v2048_v59 }
 0xf3d   : > { %2056 = vmatpush.msra.mxu0 %v2047_v61 }
 0xf3f   : > { %2057 = vmatpush.msra.mxu0 %v2046_v55 }
 0xf41   : > { %2058 = vmatpush.msra.mxu0 %v2045_v4 }
 0xf43   : > { %2059 = vmatpush.msra.mxu0 %v2044_v6 }
 0xf45   : > { %2060 = vmatpush.msra.mxu0 %v2043_v10 }
 0xf47   : > { %2061 = vmatpush.msra.mxu0 %v2042_v14 }
 0xf49   : > { %2062 = vmatpush.msra.mxu0 %v2041_v1 }
 0xf4b   : > { %2063 = vmatpush.msra.mxu0 %v2040_v11 }
 0xf4d   : > { %2064 = vmatpush.msra.mxu0 %v2039_v58 }
 0xf4f   : > { %2065 = vmatpush.msra.mxu0 %v2038_v16 }
 0xf79   : > { %v1826_v17 = vpop.permute.xlu1 %1825 }
 0xf7a   : > { %2222 = vmatmul.msk.f32.vlgmr.msrb.gmra.mxu2 %vm391_vm4, %v1826_v17 }
 0xf7c   : > { %v1855_v18 = vpop.permute.xlu2 %1854 }
 0xf7d   : > { %2223 = vmatmul.msk.f32.vlgmr.msrb.gmra.mxu3 %vm391_vm4, %v1855_v18 }
 0xf81   : > { %v1797_v25 = vpop.permute.xlu1 %1796 }
 0xf82   : > { %1817 = vmatpush.msrb.mxu1 %v1797_v25 }
 0xf83   : > { %2221 = vmatmul.msk.f32.vlgmr.msrb.gmra.mxu1 %vm391_vm4, %v1564_v19 }
 0xf84   : > { %v1884_v20 = vpop.permute.xlu2 %1883  ;;  %1928 = vmatpush.msra.mxu1 %v2401_v0 }
 0xf85   : > { %2224 = vmatmul.msk.f32.vlgmr.msrb.gmra.mxu0 %vm391_vm4, %v1884_v20  ;;  %v2021_v20 = vld [vmem:[#allocation2 + $0xb0] sm:$0xf] }
 0xf86   : > { %1929 = vmatpush.msra.mxu1 %v2401_v0 }
 0xf88   : > { %1930 = vmatpush.msra.mxu1 %v2401_v0 }
 0xf8a   : > { %1931 = vmatpush.msra.mxu1 %v2401_v0 }
 0xffd   : > { %v1849_v24 = vpop.f32.mrf.mxu2 }
0x1000   : > { %v1819_v21 = vpop.f32.mrf.mxu1  ;;  %v1878_v27 = vpop.f32.mrf.mxu3 }
0x1001   : > { %v1823_v23 = vadd.f32 %v2297_v22, %v1819_v21  ;;  %v2037_v22 = vunpack.c.l.bf16 %v2021_v20  ;;  %v2020_v21 = vld [vmem:[#allocation2 + $0xa8] sm:$0xf] }
0x1002   : > { %v1907_v29 = vpop.f32.mrf.mxu0 }
0x1003   : > { %v1852_v26 = vadd.f32 %v1849_v24, %v1823_v23  ;;  %2066 = vmatpush.msra.mxu0 %v2037_v22  ;;  %v2036_v23 = vunpack.c.l.bf16 %v2020_v21  ;;  %v2019_v24 = vld [vmem:[#allocation2 + $0xa0] sm:$0xf] }
0x1005   : > { %v1881_v28 = vadd.f32 %v1878_v27, %v1852_v26  ;;  %2067 = vmatpush.msra.mxu0 %v2036_v23  ;;  %v2035_v26 = vunpack.c.l.bf16 %v2019_v24  ;;  %v2298_v27 = vld [vmem:[%s2837_s3 + $0x5] ss:$0 sm:$0xff] }
0x1007   : > { %v1910_v30 = vadd.f32 %v1907_v29, %v1881_v28  ;;  %2068 = vmatpush.msra.mxu0 %v2035_v26 }
0x1009   : > { %v1911_v31 = vsel %vm260_vm10, 0.0, %v1910_v30 }
0x100a   : > { %v2806_v32 = vadd.f32 %v1911_v31, %v2704_v8  ;;  %v2299_v31 = vld [vmem:[%s2837_s3 + $0x6] ss:$0 sm:$0xff] }
0x100c   : > { %v1936_v0 = vmul.f32 %v2806_v32, %v2806_v32  ;;  %2225 = vmatmul.msk.f32.vlgmr.msra.gmra.mxu1 %vm261_vm0, %v2806_v32 }
0x100e   : > { %2226 = vmatmul.msk.f32.vlgmr.msra.gmra.mxu2 %vm261_vm0, %v1936_v0 }
0x1089   : > { %v1933_v2 = vpop.f32.mrf.mxu1 }
0x108a   : > { %1962 = vperm.xlu1 %2291, %v1933_v2   ;;  %v1966_v33 = vmul.f32 %v1933_v2, %v1933_v2 }
0x1091   : > { %v1957_v34 = vpop.f32.mrf.mxu2 }
0x1092   : > { %v1967_v35 = vsub.f32 %v1957_v34, %v1966_v33 }
0x1094   : > { %v1968_v36 = vadd.f32 1e-05, %v1967_v35 }
0x1096   : > { %2354 = vrsqrt.f32 %v1968_v36  ;;  %vm1975_vm6 = vweird.f32 %v1968_v36 }
0x109c   : > { %v2355_v37 = vpop.eup %2354 }
0x109d   : > { %v1970_v38 = vmul.f32 %v2355_v37, %v1968_v36  ;;  %vm1976_vm4 = vweird.f32 %v2355_v37 }
0x109e   : > { %vm1977_vm7 = vmor %vm1975_vm6, %vm1976_vm4 }
0x109f   : > { %v1971_v12 = vmul.f32 %v2355_v37, %v1970_v38 }
0x10a1   : > { %v1972_v8 = vmul.f32 0.5, %v1971_v12 }
0x10a3   : > { %v1973_v39 = vsub.f32 1.5, %v1972_v8 }
0x10a5   : > { %v1974_v40 = vmul.f32 %v2355_v37, %v1973_v39 }
0x10a7   : > { %v1978_v41 = vsel %vm1977_vm7, %v2355_v37, %v1974_v40 }
0x10a8   : > { %1981 = vperm.xlu0 %2292, %v1978_v41  }
0x10fc   : > { %v1963_v17 = vpop.permute.xlu1 %1962 }
0x10fd   : > { %v1965_v18 = vsub.f32 %v2806_v32, %v1963_v17 }
0x111a   : > { %v1982_v19 = vpop.permute.xlu0 %1981 }
0x111b   : > { %v1984_v25 = vmul.f32 %v1982_v19, %v1965_v18 }
0x111d   : > { %2227 = vmatmul.msk.f32.vlgmr.msra.gmra.mxu3 %vm261_vm0, %v1984_v25 }
0x11a0   : > { %v2015_v28 = vpop.f32.mrf.mxu3 }
0x11a1   : > { %v2016_v29 = vadd.f32 %v2298_v27, %v2015_v28 }
0x11a3   : > { %v2018_v30 = vmax.f32 %v2016_v29, 0.0 }
0x11a5   : > { %2069 = vmatmul.f32.vlgmr.msra.gmra.mxu0 %v2018_v30 }
0x1222   : > { %v2070_v0 = vpop.f32.mrf.mxu0 }
0x1223   : > { %v2071_v2 = vadd.f32 %v2299_v31, %v2070_v0 }
0x1225   : > { %2074 = vrot.lane.b32.xlu2 %v2071_v2, %s2403_s8 }
0x127f   : > { %v2075_v33 = vpop.permute.xlu2 %2074 }
0x1280   : > { %v2077_v34 = vsel %vm260_vm10, %v2071_v2, %v2075_v33 }
0x1281   : > { %v2078_v35 = vadd.f32 %v2077_v34, %v2806_v32 }
0x1283   : > { %2079 = vst.msk [vmem:[%s256_s19] sm:$0xff] %vm261_vm0, %v2078_v35 }
0x1284 PF: > { %s16_s18 = sadd.s32 1, %s2396_s18  }
0x1285   : > { %p13_p7 = scmp.ge.s32.totalorder %s16_s18, 4  }
0x1287   :  { %15 = sbr.rel (!%p13_p7) target bundleno = 1 (0x1), region = 78 }
0x128c   :  { %2099 = vsyncpa [#allocation3], 1 }
0x128d   :  { %2101 = vsyncpa [#allocation3 + $0x1], 1 }

</bundles_post_ra>
